<compile_context>
chip_gen: v7x
topology: tpu7x:2x2x1
jax: 0.10.0
libtpu: 0.0.40
codegen_flags: <defaults>
</compile_context>

<pallas_src>
import jax
import jax.numpy as jnp
from jax.experimental import pallas as pl
from jax.experimental.pallas import tpu as pltpu

LAYER_SCALE = 4.0  # MultiplyActivation scale between eqprop layers
_LANE = 128
_SUBLANE = 8


def _round_up(x, m):
    return ((x + m - 1) // m) * m


def eqprop_backbone_kernel(x_ref, w1_ref, b1_ref, w2_ref, o_ref):
    """Fused 2-layer EqProp backbone forward for one batch tile.

    x_ref  : (TB, D_in)            bf16 input (input interleave folded into W1)
    w1_ref : (D_in, D_hidden)      bf16 w1_eff = 4 * (clip(w1)[0::2] - clip(w1)[1::2])
    b1_ref : (1, D_hidden)         f32  b1_eff = 4 * b1
    w2_ref : (D_hidden, N_OUT_PAD) f32  w2_eff = 4 * (clip(w2)[:,0::2] - clip(w2)[:,1::2]), zero-padded to 128 lanes
    o_ref  : (TB, N_OUT_PAD)       f32
    """
    h = jnp.dot(x_ref[...], w1_ref[...], preferred_element_type=jnp.float32) + b1_ref[...]
    o_ref[...] = jnp.dot(h, w2_ref[...], preferred_element_type=jnp.float32).astype(o_ref.dtype)


def prepare_eqprop_params(w1, b1, w2, *, weight_dtype=jnp.bfloat16):
    """One-time weight preparation (hoisted out of the per-call path).

    Applies the param_adjuster clamp, folds the input/output interleave stages and both
    MultiplyActivation(layer_scale) factors into the weights, lane-pads W2 to 128 columns,
    and casts the dominant W1 stream to bf16.
    """
    two_d_in, d_hidden = w1.shape
    d_out2 = w2.shape[1]
    n_cls = d_out2 // 2
    d_in = two_d_in // 2

    # param_adjuster (eqprop_utils.AdjustParams): clamp weights to positive conductances.
    # NOTE: the clip must happen BEFORE the even/odd difference fold.
    w1c = jnp.clip(w1.astype(jnp.float32), 1e-6, None)
    w2c = jnp.clip(w2.astype(jnp.float32), 1e-6, None)

    # Fold input interleave [x, -x] and the first MultiplyActivation(4) into W1 / b1.
    w1_eff = ((w1c[0::2, :] - w1c[1::2, :]) * LAYER_SCALE).astype(weight_dtype)   # (D_in, d_hidden)
    b1_eff = (b1.astype(jnp.float32) * LAYER_SCALE).reshape(1, d_hidden)          # (1, d_hidden)

    # Fold differential readout (out[:,k] = o[:,2k]-o[:,2k+1]) and the second scale into W2.
    w2_eff = (w2c[:, 0::2] - w2c[:, 1::2]) * LAYER_SCALE                           # (d_hidden, n_cls)

    # Lane-dense output: pad the class dim to a multiple of 128 so stores are unmasked.
    n_out_pad = _round_up(n_cls, _LANE)
    w2_pad = jnp.zeros((d_hidden, n_out_pad), jnp.float32).at[:, :n_cls].set(w2_eff)

    return dict(w1_eff=w1_eff, b1_eff=b1_eff, w2_pad=w2_pad, n_cls=n_cls, d_in=d_in)


def eqprop_backbone_forward(x, params, *, tile_b=None):
    """Hot path: cast x, launch the fused kernel, slice to the real class count."""
    w1_eff = params["w1_eff"]
    b1_eff = params["b1_eff"]
    w2_pad = params["w2_pad"]
    n_cls = params["n_cls"]

    B, d_in = x.shape
    assert d_in == params["d_in"], (d_in, params["d_in"])
    d_hidden = w1_eff.shape[1]
    n_out_pad = w2_pad.shape[1]

    x = x.astype(w1_eff.dtype)  # bf16: halves the dominant HBM stream

    if tile_b is None:
        # Small batch: a single full-batch tile (splitting is pure per-step overhead).
        # Large batch: 512-row tiles (multiple of 256 -> fills v6e/v7x MXU, >=2 parallel steps).
        tile_b = min(512, _round_up(B, _SUBLANE))
    grid_b = pl.cdiv(B, tile_b)

    flops = 2 * B * (d_in * d_hidden + d_hidden * n_out_pad)
    bytes_accessed = (
        x.size * x.dtype.itemsize
        + w1_eff.size * w1_eff.dtype.itemsize
        + b1_eff.size * 4
        + w2_pad.size * 4
        + B * n_out_pad * 4
    )

    out = pl.pallas_call(
        eqprop_backbone_kernel,
        out_shape=jax.ShapeDtypeStruct((B, n_out_pad), jnp.float32),
        grid_spec=pltpu.PrefetchScalarGridSpec(
            num_scalar_prefetch=0,
            grid=(grid_b,),
            in_specs=[
                pl.BlockSpec((tile_b, d_in), lambda i: (i, 0)),
                pl.BlockSpec((d_in, d_hidden), lambda i: (0, 0)),
                pl.BlockSpec((1, d_hidden), lambda i: (0, 0)),
                pl.BlockSpec((d_hidden, n_out_pad), lambda i: (0, 0)),
            ],
            out_specs=pl.BlockSpec((tile_b, n_out_pad), lambda i: (i, 0)),
        ),
        compiler_params=pltpu.CompilerParams(
            dimension_semantics=("parallel",),
        ),
        cost_estimate=pl.CostEstimate(
            flops=flops, transcendentals=0, bytes_accessed=bytes_accessed
        ),
    )(x, w1_eff, b1_eff, w2_pad)

    return out[:, :n_cls]


def _reference_forward(x, w1, b1, w2):
    """Pure-JAX f32 reference of the original (un-folded) module semantics."""
    B, D_in = x.shape
    x_i = jnp.stack([x, -x], axis=-1).reshape(B, 2 * D_in)
    w1c = jnp.clip(w1, 1e-6, None)
    w2c = jnp.clip(w2, 1e-6, None)
    h = (jnp.dot(x_i, w1c, precision=jax.lax.Precision.HIGHEST) + b1) * LAYER_SCALE
    o = jnp.dot(h, w2c, precision=jax.lax.Precision.HIGHEST) * LAYER_SCALE
    return o[:, 0::2] - o[:, 1::2]


def _matched_precision_reference(x, params):
    """Pure-JAX reference using the folded weights and the same bf16/f32 mixed precision."""
    w1_eff, b1_eff, w2_pad = params["w1_eff"], params["b1_eff"], params["w2_pad"]
    h = jnp.dot(x.astype(w1_eff.dtype), w1_eff, preferred_element_type=jnp.float32) + b1_eff
    o = jnp.dot(h, w2_pad, preferred_element_type=jnp.float32,
                precision=jax.lax.Precision.HIGHEST)
    return o[:, : params["n_cls"]]


if __name__ == "__main__":
    # Shapes consistent with the module defaults: cfg=[784*2, 128, 10*2].
    # B=200 is a single full-batch tile (25 sublane groups) -- no padding anywhere.
    B, D_in, D_hidden, N_CLS = 200, 784, 128, 10
    key = jax.random.PRNGKey(0)
    kx, k1, kb, k2 = jax.random.split(key, 4)

    x = jax.random.normal(kx, (B, D_in), dtype=jnp.float32)

    # Deterministic nn.Linear-style init (uniform +/- 1/sqrt(fan_in)), stored (in, out).
    lim1 = 1.0 / jnp.sqrt(2.0 * D_in)
    w1 = jax.random.uniform(k1, (2 * D_in, D_hidden), minval=-lim1, maxval=lim1, dtype=jnp.float32)
    b1 = jax.random.uniform(kb, (D_hidden,), minval=-lim1, maxval=lim1, dtype=jnp.float32)
    lim2 = 1.0 / jnp.sqrt(float(D_hidden))
    w2 = jax.random.uniform(k2, (D_hidden, 2 * N_CLS), minval=-lim2, maxval=lim2, dtype=jnp.float32)

    # One-time weight preparation (hoisted out of the per-call path).
    params = jax.block_until_ready(prepare_eqprop_params(w1, b1, w2))

    fwd = jax.jit(lambda xx: eqprop_backbone_forward(xx, params))
    out = jax.block_until_ready(fwd(x))

    assert out.shape == (B, N_CLS), out.shape

    # (a) Plumbing / algebra check against a same-precision JAX reference (tight tolerance).
    matched = _matched_precision_reference(x, params)
    err_matched = float(jnp.max(jnp.abs(out - matched)))
    assert jnp.allclose(out, matched, atol=5e-3, rtol=5e-3), err_matched

    # (b) Semantics check against the original un-folded f32 forward (bf16 drift budgeted).
    ref = _reference_forward(x, w1, b1, w2)
    err_ref = float(jnp.max(jnp.abs(out - ref)))
    assert jnp.allclose(out, ref, atol=5e-2, rtol=2e-2), err_ref

    print("KERNEL_OK")
</pallas_src>

<mosaic_0001>
module attributes {stable_mosaic.version = 11 : i64} {
  func.func @eqprop_backbone_kernel(%arg0: i32, %arg1: memref<200x784xbf16, #tpu.memory_space<vmem>>, %arg2: memref<784x128xbf16, #tpu.memory_space<vmem>>, %arg3: memref<1x128xf32, #tpu.memory_space<vmem>>, %arg4: memref<128x128xf32, #tpu.memory_space<vmem>>, %arg5: memref<200x128xf32, #tpu.memory_space<vmem>>) attributes {dimension_semantics = [#tpu.dimension_semantics<parallel>], iteration_bounds = array<i64: 1>, scalar_prefetch = 0 : i64, scratch_operands = 0 : i64, tpu.core_type = #tpu.core_type<tc>, window_params = [{transform_indices = @transform_0, window_bounds = array<i64: 200, 784>}, {pipeline_mode = #tpu.pipeline_mode<synchronous>, transform_indices = @transform_1, window_bounds = array<i64: 784, 128>}, {pipeline_mode = #tpu.pipeline_mode<synchronous>, transform_indices = @transform_2, window_bounds = array<i64: 1, 128>}, {pipeline_mode = #tpu.pipeline_mode<synchronous>, transform_indices = @transform_3, window_bounds = array<i64: 128, 128>}, {transform_indices = @transform_4, window_bounds = array<i64: 200, 128>}]} {
    %c0 = arith.constant 0 : index
    %c0_0 = arith.constant 0 : index
    %0 = vector.load %arg1[%c0, %c0_0] : memref<200x784xbf16, #tpu.memory_space<vmem>>, vector<200x784xbf16>
    %c0_1 = arith.constant 0 : index
    %c0_2 = arith.constant 0 : index
    %1 = vector.load %arg2[%c0_1, %c0_2] : memref<784x128xbf16, #tpu.memory_space<vmem>>, vector<784x128xbf16>
    %cst = arith.constant dense<0.000000e+00> : vector<200x128xf32>
    %2 = tpu.matmul %0, %1, %cst {dimension_numbers = #tpu.dot_dimension_numbers<[1], [0], [0], [1], [0, 0, 1, 1], [], []>} : vector<200x784xbf16>, vector<784x128xbf16>, vector<200x128xf32> -> vector<200x128xf32>
    %c0_3 = arith.constant 0 : index
    %c0_4 = arith.constant 0 : index
    %3 = vector.load %arg3[%c0_3, %c0_4] : memref<1x128xf32, #tpu.memory_space<vmem>>, vector<1x128xf32>
    %4 = vector.broadcast %3 : vector<1x128xf32> to vector<200x128xf32>
    %5 = arith.addf %2, %4 : vector<200x128xf32>
    %c0_5 = arith.constant 0 : index
    %c0_6 = arith.constant 0 : index
    %6 = vector.load %arg4[%c0_5, %c0_6] : memref<128x128xf32, #tpu.memory_space<vmem>>, vector<128x128xf32>
    %cst_7 = arith.constant dense<0.000000e+00> : vector<200x128xf32>
    %7 = tpu.matmul %5, %6, %cst_7 {dimension_numbers = #tpu.dot_dimension_numbers<[1], [0], [0], [1], [0, 0, 1, 1], [], []>} : vector<200x128xf32>, vector<128x128xf32>, vector<200x128xf32> -> vector<200x128xf32>
    %c0_8 = arith.constant 0 : index
    %c0_9 = arith.constant 0 : index
    %8 = vector.load %arg5[%c0_8, %c0_9] : memref<200x128xf32, #tpu.memory_space<vmem>>, vector<200x128xf32>
    tpu.vector_store %arg5[%c0_8, %c0_9], %7 {strides = array<i32>} : memref<200x128xf32, #tpu.memory_space<vmem>>, vector<200x128xf32>,
    return
  }
  func.func @transform_0(%arg0: i32) -> (i32, i32) {
    %c0_i32 = arith.constant 0 : i32
    %c0_i32_0 = arith.constant 0 : i32
    return %arg0, %c0_i32 : i32, i32
  }
  func.func @transform_1(%arg0: i32) -> (i32, i32) {
    %c0_i32 = arith.constant 0 : i32
    %c0_i32_0 = arith.constant 0 : i32
    %c0_i32_1 = arith.constant 0 : i32
    return %c0_i32, %c0_i32_0 : i32, i32
  }
  func.func @transform_2(%arg0: i32) -> (i32, i32) {
    %c0_i32 = arith.constant 0 : i32
    %c0_i32_0 = arith.constant 0 : i32
    %c0_i32_1 = arith.constant 0 : i32
    return %c0_i32, %c0_i32_0 : i32, i32
  }
  func.func @transform_3(%arg0: i32) -> (i32, i32) {
    %c0_i32 = arith.constant 0 : i32
    %c0_i32_0 = arith.constant 0 : i32
    %c0_i32_1 = arith.constant 0 : i32
    return %c0_i32, %c0_i32_0 : i32, i32
  }
  func.func @transform_4(%arg0: i32) -> (i32, i32) {
    %c0_i32 = arith.constant 0 : i32
    %c0_i32_0 = arith.constant 0 : i32
    return %arg0, %c0_i32 : i32, i32
  }
}

</mosaic_0001>

<bundles_post_ra>
// kernel: _lambda_.1
= control target key start
LH: loop header
LB: loop body
LE: loop exit
PB: predicated region body
PF: predicated region fallthrough
CT: control target
= control target key end

     0   :  { %vm2653_vm0 = vmmov 0   ;;  %vm961_vm1 = vcmask 130048   ;;  %s3491_s1 = inlined_call_operand.vmem [shape: bf16[784,128], index: 1, kind: input, shape index: {}]   ;;  %s3492_s0 = inlined_call_operand.vmem [shape: bf16[200,784], index: 0, kind: input, shape index: {}]   ;;  %s3493_s3 = inlined_call_operand.vmem [shape: f32[128,128], index: 3, kind: input, shape index: {}]   ;;  %s3494_s2 = inlined_call_operand.vmem [shape: f32[1,128], index: 2, kind: input, shape index: {}]   ;;  %s3495_s4 = inlined_call_operand.vmem [shape: f32[200,128], index: 4, kind: output, shape index: {}]  }
   0x1   :  { %v2475_v0 = vld [vmem:[%s3491_s1 + $0x40] sm:$0xff]   ;;  %v2477_v2 = vld [vmem:[%s3491_s1 + $0x48] sm:$0xff]   ;;  %v2479_v4 = vld [vmem:[%s3491_s1 + $0x50] sm:$0xff]  }
   0x2   :  { %v2476_v1 = vld [vmem:[%s3491_s1] sm:$0xff]   ;;  %1934 = vmatprep.subr.bf16.mxu0 %v2475_v0  ;;  %2456 = vmatprep.subr.bf16.mxu1 %v2475_v0  ;;  %v2478_v3 = vld [vmem:[%s3491_s1 + $0x8] sm:$0xff]   ;;  %v2480_v5 = vld [vmem:[%s3491_s1 + $0x10] sm:$0xff]  }
   0x3   :  { %1935 = vmatpush3.bf16.msra.mxu0 %v2476_v1  ;;  %2464 = vmatpush3.bf16.msra.mxu1 %v2476_v1  ;;  %v2481_v6 = vld [vmem:[%s3491_s1 + $0x58] sm:$0xff]   ;;  %v2483_v8 = vld [vmem:[%s3491_s1 + $0x60] sm:$0xff]   ;;  %v2485_v10 = vld [vmem:[%s3491_s1 + $0x68] sm:$0xff]  }
   0x4   :  { %1936 = vmatprep.subr.bf16.mxu0 %v2477_v2  ;;  %2457 = vmatprep.subr.bf16.mxu1 %v2477_v2  ;;  %v2482_v7 = vld [vmem:[%s3491_s1 + $0x18] sm:$0xff]   ;;  %v2484_v9 = vld [vmem:[%s3491_s1 + $0x20] sm:$0xff]   ;;  %v2496_v12 = vld [vmem:[%s3492_s0 + $0x18c] ss:$28 sps:$4 sm:$0xff]  }
   0x5   :  { %v2493_v11 = vld [vmem:[%s3492_s0 + $0x4] ss:$28 sps:$4 sm:$0xff]   ;;  %v2486_v13 = vld [vmem:[%s3491_s1 + $0x28] sm:$0xff]   ;;  %v2487_v14 = vld [vmem:[%s3491_s1 + $0x70] sm:$0xff]   ;;  %1089 = vmatprep.mubr.bf16.mxu1 %v2496_v12 }
   0x6   :  { %1033 = vmatprep.mubr.bf16.mxu0 %v2493_v11  ;;  %v2488_v15 = vld [vmem:[%s3491_s1 + $0x30] sm:$0xff]   ;;  %v2489_v16 = vld [vmem:[%s3491_s1 + $0x78] sm:$0xff]   ;;  %v2497_v18 = vld [vmem:[%s3491_s1 + $0xc0] sm:$0xff]  }
   0x7   :  { %1937 = vmatpush3.bf16.msra.mxu0 %v2478_v3  ;;  %2465 = vmatpush3.bf16.msra.mxu1 %v2478_v3  ;;  %v2490_v17 = vld [vmem:[%s3491_s1 + $0x38] sm:$0xff]   ;;  %v2494_v20 = vld [vmem:[%s3492_s0 + $0x188] ss:$28 sps:$4 sm:$0xff]   ;;  %v2507_v26 = vld [vmem:[%s3491_s1 + $0xd0] sm:$0xff]  }
   0x8   :  { %1938 = vmatprep.subr.bf16.mxu0 %v2479_v4  ;;  %2458 = vmatprep.subr.bf16.mxu1 %v2479_v4  ;;  %v2491_v19 = vld [vmem:[%s3492_s0] ss:$28 sps:$4 sm:$0xff]   ;;  %v2499_v22 = vld [vmem:[%s3491_s1 + $0xc8] sm:$0xff]   ;;  %v2505_v27 = vld [vmem:[%s3492_s0 + $0x38] ss:$28 sps:$4 sm:$0xff]  }
   0x9   :  { %v2498_v21 = vld [vmem:[%s3491_s1 + $0x80] sm:$0xff]   ;;  %v2500_v23 = vld [vmem:[%s3492_s0 + $0x3c] ss:$28 sps:$4 sm:$0xff]   ;;  %v2504_v25 = vld [vmem:[%s3491_s1 + $0x88] sm:$0xff]  }
   0xa   :  { %v2502_v24 = vld [vmem:[%s3492_s0 + $0x1c4] ss:$28 sps:$4 sm:$0xff]   ;;  %v2508_v30 = vld [vmem:[%s3491_s1 + $0x90] sm:$0xff]   ;;  %v2511_v32 = vld [vmem:[%s3492_s0 + $0x1fc] ss:$28 sps:$4 sm:$0xff]  }
   0xb   :  { %1939 = vmatpush3.bf16.msra.mxu0 %v2480_v5  ;;  %2466 = vmatpush3.bf16.msra.mxu1 %v2480_v5  ;;  %v2506_v28 = vld [vmem:[%s3492_s0 + $0x1c0] ss:$28 sps:$4 sm:$0xff]   ;;  %v2509_v31 = vld [vmem:[%s3492_s0 + $0x74] ss:$28 sps:$4 sm:$0xff]   ;;  %v2527_v34 = vld [vmem:[%s3491_s1 + $0x148] sm:$0xff]   ;;  %v2651_v5 = vmov 0.0  }
   0xc   :  { %1940 = vmatprep.subr.bf16.mxu0 %v2481_v6  ;;  %2459 = vmatprep.subr.bf16.mxu1 %v2481_v6  ;;  %v2524_v29 = vld [vmem:[%s3491_s1 + $0x140] sm:$0xff]   ;;  %v2515_v35 = vld [vmem:[%s3491_s1 + $0xd8] sm:$0xff]   ;;  %v2528_v36 = vld [vmem:[%s3491_s1 + $0x108] sm:$0xff]  }
   0xd   :  { %v2526_v33 = vld [vmem:[%s3491_s1 + $0x100] sm:$0xff]   ;;  %v2516_v37 = vld [vmem:[%s3491_s1 + $0x98] sm:$0xff]   ;;  %v2513_v38 = vld [vmem:[%s3492_s0 + $0x70] ss:$28 sps:$4 sm:$0xff]  }
   0xe   :  { %v2514_v39 = vld [vmem:[%s3492_s0 + $0x1f8] ss:$28 sps:$4 sm:$0xff]   ;;  %v2523_v40 = vld [vmem:[%s3491_s1 + $0xe0] sm:$0xff]   ;;  %v2517_v41 = vld [vmem:[%s3492_s0 + $0xac] ss:$28 sps:$4 sm:$0xff]  }
   0xf   :  { %1941 = vmatpush3.bf16.msra.mxu0 %v2482_v7  ;;  %2467 = vmatpush3.bf16.msra.mxu1 %v2482_v7  ;;  %v2519_v42 = vld [vmem:[%s3492_s0 + $0x234] ss:$28 sps:$4 sm:$0xff]   ;;  %v2525_v43 = vld [vmem:[%s3491_s1 + $0xa0] sm:$0xff]   ;;  %v2529_v46 = vld [vmem:[%s3491_s1 + $0xe8] sm:$0xff]  }
  0x10   :  { %1942 = vmatprep.subr.bf16.mxu0 %v2483_v8  ;;  %2460 = vmatprep.subr.bf16.mxu1 %v2483_v8  ;;  %v2537_v44 = vld [vmem:[%s3491_s1 + $0x150] sm:$0xff]   ;;  %v2540_v47 = vld [vmem:[%s3491_s1 + $0x158] sm:$0xff]   ;;  %v2521_v49 = vld [vmem:[%s3492_s0 + $0xa8] ss:$28 sps:$4 sm:$0xff]  }
  0x11   :  { %v2538_v45 = vld [vmem:[%s3491_s1 + $0x110] sm:$0xff]   ;;  %v2542_v48 = vld [vmem:[%s3491_s1 + $0x118] sm:$0xff]   ;;  %v2534_v51 = vld [vmem:[%s3491_s1 + $0xa8] sm:$0xff]  }
  0x12   :  { %v2522_v50 = vld [vmem:[%s3492_s0 + $0x230] ss:$28 sps:$4 sm:$0xff]   ;;  %v2530_v53 = vld [vmem:[%s3492_s0 + $0xe4] ss:$28 sps:$4 sm:$0xff]   ;;  %v2550_v58 = vld [vmem:[%s3491_s1 + $0xf8] sm:$0xff]  }
  0x13   :  { %1943 = vmatpush3.bf16.msra.mxu0 %v2484_v9  ;;  %2468 = vmatpush3.bf16.msra.mxu1 %v2484_v9  ;;  %v2539_v52 = vld [vmem:[%s3491_s1 + $0xf0] sm:$0xff]   ;;  %v2532_v54 = vld [vmem:[%s3492_s0 + $0x26c] ss:$28 sps:$4 sm:$0xff]   ;;  %v2548_v55 = vld [vmem:[%s3491_s1 + $0x160] sm:$0xff]  }
  0x14   :  { %1944 = vmatprep.subr.bf16.mxu0 %v2485_v10  ;;  %2461 = vmatprep.subr.bf16.mxu1 %v2485_v10  ;;  %v2549_v56 = vld [vmem:[%s3491_s1 + $0x120] sm:$0xff]   ;;  %v2541_v57 = vld [vmem:[%s3491_s1 + $0xb0] sm:$0xff]   ;;  %v2552_v59 = vld [vmem:[%s3491_s1 + $0x168] sm:$0xff]  }
  0x15   :  { %v2553_v60 = vld [vmem:[%s3491_s1 + $0x128] sm:$0xff]   ;;  %v114_v61 = vld [vmem:[%s3492_s0 + $0x2a0] sm:$0xff]  ;;  %v2551_v63 = vld [vmem:[%s3491_s1 + $0xb8] sm:$0xff]  }
  0x16   :  { %v2535_v62 = vld [vmem:[%s3492_s0 + $0xe0] ss:$28 sps:$4 sm:$0xff]   ;;  %v2536_v0 = vld [vmem:[%s3492_s0 + $0x268] ss:$28 sps:$4 sm:$0xff]   ;;  %v2560_v2 = vld [vmem:[%s3491_s1 + $0x170] sm:$0xff]   ;;  %v1866_v3 = vcombine.high %v114_v61, %v114_v61  ;;  %v1865_v9 = vcombine.low %v114_v61, %v114_v61 }
  0x17   :  { %1945 = vmatpush3.bf16.msra.mxu0 %v2486_v13  ;;  %2469 = vmatpush3.bf16.msra.mxu1 %v2486_v13  ;;  %v2543_v1 = vld [vmem:[%s3492_s0 + $0x11c] ss:$28 sps:$4 sm:$0xff]   ;;  %v2561_v4 = vld [vmem:[%s3491_s1 + $0x130] sm:$0xff]   ;;  %v2558_v11 = vld [vmem:[%s3492_s0 + $0xc] ss:$28 sps:$4 sm:$0xff]  }
  0x18   :  { %1946 = vmatprep.subr.bf16.mxu0 %v2487_v14  ;;  %2462 = vmatprep.subr.bf16.mxu1 %v2487_v14  ;;  %v2563_v6 = vld [vmem:[%s3491_s1 + $0x178] sm:$0xff]   ;;  %v2554_v10 = vld [vmem:[%s3492_s0 + $0x154] ss:$28 sps:$4 sm:$0xff]   ;;  %v2556_v12 = vld [vmem:[%s3492_s0 + $0x8] ss:$28 sps:$4 sm:$0xff]  }
  0x19   :  { %v2564_v7 = vld [vmem:[%s3491_s1 + $0x138] sm:$0xff]   ;;  %v2559_v13 = vld [vmem:[%s3492_s0 + $0x150] ss:$28 sps:$4 sm:$0xff]   ;;  %v2562_v14 = vld [vmem:[%s3491_s1 + $0x180] sm:$0xff]  }
  0x1a   :  { %v2546_v8 = vld [vmem:[%s3492_s0 + $0x118] ss:$28 sps:$4 sm:$0xff]  }
  0x1b   :  { %1947 = vmatpush3.bf16.msra.mxu0 %v2488_v15  ;;  %2470 = vmatpush3.bf16.msra.mxu1 %v2488_v15  ;;  %v2565_v15 = vld [vmem:[%s3492_s0 + $0x44] ss:$28 sps:$4 sm:$0xff]   ;;  %v2632_v61 = vld [vmem:[%s3492_s0 + $0x27c] ss:$28 sps:$4 sm:$0xff]  }
  0x1c   :  { %1948 = vmatprep.subr.bf16.mxu0 %v2489_v16  ;;  %2463 = vmatprep.subr.bf16.mxu1 %v2489_v16  ;;  %v2569_v16 = vld [vmem:[%s3492_s0 + $0x14] ss:$28 sps:$4 sm:$0xff]  }
  0x1f   :  { %1949 = vmatpush3.bf16.msra.mxu0 %v2490_v17  ;;  %2471 = vmatpush3.bf16.msra.mxu1 %v2490_v17  ;;  %v2567_v17 = vld [vmem:[%s3492_s0 + $0x10] ss:$28 sps:$4 sm:$0xff]  }
  0x20   :  { %2028 = vmatprep.subr.bf16.mxu1 %v2497_v18  ;;  %2122 = vmatprep.subr.bf16.mxu0 %v2524_v29  ;;  %v2570_v18 = vld [vmem:[%s3492_s0 + $0x40] ss:$28 sps:$4 sm:$0xff]   ;;  %v2587_v29 = vld [vmem:[%s3492_s0 + $0xe8] ss:$28 sps:$4 sm:$0xff]  }
  0x22   :  { %1034 = vmatmul.mubr.bf16.vlgmr.msra.gmra.mrb[0].mxu0 %v2491_v19  ;;  %1090 = vmatmul.mubr.bf16.vlgmr.msra.gmra.mrb[0].mxu1 %v2494_v20  ;;  %v2571_v19 = vld [vmem:[%s3492_s0 + $0x7c] ss:$28 sps:$4 sm:$0xff]   ;;  %v2573_v20 = vld [vmem:[%s3492_s0 + $0x4c] ss:$28 sps:$4 sm:$0xff]  }
  0x23   :  { %2029 = vmatpush3.bf16.msra.mxu1 %v2498_v21  ;;  %1041 = vmatprep.mubr.bf16.mxu0 %v2500_v23  ;;  %v2575_v21 = vld [vmem:[%s3492_s0 + $0x78] ss:$28 sps:$4 sm:$0xff]  }
  0x24   :  { %2030 = vmatprep.subr.bf16.mxu1 %v2499_v22  ;;  %1097 = vmatprep.mubr.bf16.mxu1 %v2502_v24  ;;  %v2576_v22 = vld [vmem:[%s3492_s0 + $0x48] ss:$28 sps:$4 sm:$0xff]   ;;  %v2577_v23 = vld [vmem:[%s3492_s0 + $0xb4] ss:$28 sps:$4 sm:$0xff]  }
  0x25   :  { %2123 = vmatpush3.bf16.msra.mxu0 %v2526_v33  ;;  %v2579_v24 = vld [vmem:[%s3492_s0 + $0x84] ss:$28 sps:$4 sm:$0xff]  }
  0x26   :  { %2124 = vmatprep.subr.bf16.mxu0 %v2527_v34  ;;  %v2593_v33 = vld [vmem:[%s3492_s0 + $0x120] ss:$28 sps:$4 sm:$0xff]   ;;  %v2594_v34 = vld [vmem:[%s3492_s0 + $0xf0] ss:$28 sps:$4 sm:$0xff]  }
  0x27   :  { %2031 = vmatpush3.bf16.msra.mxu1 %v2504_v25  ;;  %v2581_v25 = vld [vmem:[%s3492_s0 + $0xb0] ss:$28 sps:$4 sm:$0xff]  }
  0x28   :  { %2032 = vmatprep.subr.bf16.mxu1 %v2507_v26  ;;  %v2582_v26 = vld [vmem:[%s3492_s0 + $0x80] ss:$28 sps:$4 sm:$0xff]  }
  0x29   :  { %2125 = vmatpush3.bf16.msra.mxu0 %v2528_v36  ;;  %v2597_v36 = vld [vmem:[%s3492_s0 + $0x12c] ss:$28 sps:$4 sm:$0xff]  }
  0x2a   :  { %1042 = vmatmul.mubr.bf16.gmra.mrb[4].mxu0 %v2505_v27  ;;  %1098 = vmatmul.mubr.bf16.gmra.mrb[4].mxu1 %v2506_v28  ;;  %v2583_v27 = vld [vmem:[%s3492_s0 + $0xec] ss:$28 sps:$4 sm:$0xff]   ;;  %v2585_v28 = vld [vmem:[%s3492_s0 + $0xbc] ss:$28 sps:$4 sm:$0xff]  }
  0x2b   :  { %2033 = vmatpush3.bf16.msra.mxu1 %v2508_v30  ;;  %1049 = vmatprep.mubr.bf16.mxu0 %v2509_v31  ;;  %v2588_v30 = vld [vmem:[%s3492_s0 + $0xb8] ss:$28 sps:$4 sm:$0xff]   ;;  %v2589_v31 = vld [vmem:[%s3492_s0 + $0x124] ss:$28 sps:$4 sm:$0xff]  }
  0x2c   :  { %1105 = vmatprep.mubr.bf16.mxu1 %v2511_v32  ;;  %2034 = vmatprep.subr.bf16.mxu1 %v2515_v35  ;;  %v2591_v32 = vld [vmem:[%s3492_s0 + $0xf4] ss:$28 sps:$4 sm:$0xff]   ;;  %v2595_v35 = vld [vmem:[%s3492_s0 + $0x15c] ss:$28 sps:$4 sm:$0xff]  }
  0x2d   :  { %2126 = vmatprep.subr.bf16.mxu0 %v2537_v44  ;;  %v2609_v44 = vld [vmem:[%s3492_s0 + $0x19c] ss:$28 sps:$4 sm:$0xff]  }
  0x2e   :  { %2127 = vmatpush3.bf16.msra.mxu0 %v2538_v45  ;;  %v2611_v45 = vld [vmem:[%s3492_s0 + $0x1c8] ss:$28 sps:$4 sm:$0xff]  }
  0x2f   :  { %2035 = vmatpush3.bf16.msra.mxu1 %v2516_v37  ;;  %2128 = vmatprep.subr.bf16.mxu0 %v2540_v47  ;;  %v2599_v37 = vld [vmem:[%s3492_s0 + $0x158] ss:$28 sps:$4 sm:$0xff]   ;;  %v2613_v47 = vld [vmem:[%s3492_s0 + $0x204] ss:$28 sps:$4 sm:$0xff]  }
  0x30   :  { %2036 = vmatprep.subr.bf16.mxu1 %v2523_v40  ;;  %v2603_v40 = vld [vmem:[%s3492_s0 + $0x164] ss:$28 sps:$4 sm:$0xff]  }
  0x32   :  { %1050 = vmatmul.mubr.bf16.gmra.mrb[8].mxu0 %v2513_v38  ;;  %1106 = vmatmul.mubr.bf16.gmra.mrb[8].mxu1 %v2514_v39  ;;  %v2600_v38 = vld [vmem:[%s3492_s0 + $0x128] ss:$28 sps:$4 sm:$0xff]   ;;  %v2601_v39 = vld [vmem:[%s3492_s0 + $0x194] ss:$28 sps:$4 sm:$0xff]  }
  0x33   :  { %1057 = vmatprep.mubr.bf16.mxu0 %v2517_v41  ;;  %1113 = vmatprep.mubr.bf16.mxu1 %v2519_v42  ;;  %v2605_v41 = vld [vmem:[%s3492_s0 + $0x190] ss:$28 sps:$4 sm:$0xff]   ;;  %v2606_v42 = vld [vmem:[%s3492_s0 + $0x160] ss:$28 sps:$4 sm:$0xff]  }
  0x34   :  { %2037 = vmatpush3.bf16.msra.mxu1 %v2525_v43  ;;  %2129 = vmatpush3.bf16.msra.mxu0 %v2542_v48  ;;  %v2607_v43 = vld [vmem:[%s3492_s0 + $0x1cc] ss:$28 sps:$4 sm:$0xff]   ;;  %v2615_v48 = vld [vmem:[%s3492_s0 + $0x1d4] ss:$28 sps:$4 sm:$0xff]  }
  0x35   :  { %2038 = vmatprep.subr.bf16.mxu1 %v2529_v46  ;;  %2130 = vmatprep.subr.bf16.mxu0 %v2548_v55  ;;  %v2612_v46 = vld [vmem:[%s3492_s0 + $0x198] ss:$28 sps:$4 sm:$0xff]  }
  0x36   :  { %v2625_v55 = vld [vmem:[%s3492_s0 + $0x274] ss:$28 sps:$4 sm:$0xff]  }
  0x38   :  { %2039 = vmatpush3.bf16.msra.mxu1 %v2534_v51  ;;  %2131 = vmatpush3.bf16.msra.mxu0 %v2549_v56  ;;  %v2619_v51 = vld [vmem:[%s3492_s0 + $0x23c] ss:$28 sps:$4 sm:$0xff]   ;;  %v2627_v56 = vld [vmem:[%s3492_s0 + $0x244] ss:$28 sps:$4 sm:$0xff]  }
  0x39   :  { %2040 = vmatprep.subr.bf16.mxu1 %v2539_v52  ;;  %2132 = vmatprep.subr.bf16.mxu0 %v2552_v59  ;;  %v2621_v52 = vld [vmem:[%s3492_s0 + $0x20c] ss:$28 sps:$4 sm:$0xff]   ;;  %v2630_v59 = vld [vmem:[%s3492_s0 + $0x240] ss:$28 sps:$4 sm:$0xff]  }
  0x3a   :  { %1058 = vmatmul.mubr.bf16.gmra.mrb[12].mxu0 %v2521_v49  ;;  %1114 = vmatmul.mubr.bf16.gmra.mrb[12].mxu1 %v2522_v50  ;;  %v2617_v49 = vld [vmem:[%s3492_s0 + $0x200] ss:$28 sps:$4 sm:$0xff]   ;;  %v2618_v50 = vld [vmem:[%s3492_s0 + $0x1d0] ss:$28 sps:$4 sm:$0xff]  }
  0x3b   :  { %1065 = vmatprep.mubr.bf16.mxu0 %v2530_v53  ;;  %1121 = vmatprep.mubr.bf16.mxu1 %v2532_v54  ;;  %v2623_v53 = vld [vmem:[%s3492_s0 + $0x238] ss:$28 sps:$4 sm:$0xff]   ;;  %v2624_v54 = vld [vmem:[%s3492_s0 + $0x208] ss:$28 sps:$4 sm:$0xff]  }
  0x3c   :  { %2041 = vmatpush3.bf16.msra.mxu1 %v2541_v57  ;;  %2133 = vmatpush3.bf16.msra.mxu0 %v2553_v60  ;;  %v115_v57 = vld [vmem:[%s3492_s0 + $0x2a8] sm:$0xff] }
  0x3d   :  { %2042 = vmatprep.subr.bf16.mxu1 %v2550_v58  ;;  %2134 = vmatprep.subr.bf16.mxu0 %v2560_v2  ;;  %v2629_v58 = vld [vmem:[%s3492_s0 + $0x270] ss:$28 sps:$4 sm:$0xff]   ;;  %v1868_v60 = vcombine.high %v115_v57, %v115_v57 }
  0x40   :  { %2043 = vmatpush3.bf16.msra.mxu1 %v2551_v63  ;;  %2135 = vmatpush3.bf16.msra.mxu0 %v2561_v4  ;;  %v2652_v63 = vmov 0.0|0.0   ;;  %v2635_v4 = vld [vmem:[%s3492_s0 + $0x278] ss:$28 sps:$4 sm:$0xff]  }
  0x41   :  { %2271 = vmatprep.subr.bf16.mxu1 %v2651_v5  ;;  %2136 = vmatprep.subr.bf16.mxu0 %v2563_v6 }
  0x42   :  { %1066 = vmatmul.mubr.bf16.gmra.mrb[16].mxu0 %v2535_v62  ;;  %1122 = vmatmul.mubr.bf16.gmra.mrb[16].mxu1 %v2536_v0  ;;  %v116_v62 = vld [vmem:[%s3492_s0 + $0x2b0] sm:$0xff]  ;;  %v1545_v0 = vld [vmem:[%s3493_s3] sm:$0xff] }
  0x43   :  { %1073 = vmatprep.mubr.bf16.mxu0 %v2543_v1  ;;  %1129 = vmatprep.mubr.bf16.mxu1 %v1866_v3  ;;  %v1546_v1 = vld [vmem:[%s3493_s3 + $0x8] sm:$0xff]  ;;  %v1867_v3 = vcombine.low %v115_v57, %v115_v57  ;;  %v1870_v6 = vcombine.high %v116_v62, %v116_v62 }
  0x44   :  { %2137 = vmatpush3.bf16.msra.mxu0 %v2564_v7  ;;  %v2433_v2 = vpack.c.bf16 %v1546_v1, %v1545_v0  ;;  %v1869_v7 = vcombine.low %v116_v62, %v116_v62  ;;  %v1560_v0 = vld [vmem:[%s3493_s3 + $0x78] sm:$0xff] }
  0x45   :  { %2432 = vmatprep.subr.bf16.mxu0 %v2652_v63 }
  0x4a   :  { %1074 = vmatmul.mubr.bf16.gmra.mrb[20].mxu0 %v2546_v8  ;;  %1130 = vmatmul.mubr.bf16.gmra.mrb[20].mxu1 %v1865_v9  ;;  %v2638_v8 = vld [vmem:[%s3492_s0 + $0x18] ss:$28 sps:$4 sm:$0xff]  }
  0x4b   :  { %1081 = vmatprep.mubr.bf16.mxu0 %v2554_v10  ;;  %1169 = vmatprep.mubr.bf16.mxu1 %v2558_v11  ;;  %v1547_v9 = vld [vmem:[%s3493_s3 + $0x10] sm:$0xff]  ;;  %v1548_v10 = vld [vmem:[%s3493_s3 + $0x18] sm:$0xff] }
  0x4c   :  { %v2436_v11 = vpack.c.bf16 %v1548_v10, %v1547_v9 }
  0x52   :  { %1082 = vmatmul.mubr.bf16.gmra.mrb[24].mxu0 %v2559_v13  ;;  %1170 = vmatmul.mubr.bf16.vlgmr.msra.gmra.mrb[24].mxu1 %v2556_v12  ;;  %v2639_v12 = vld [vmem:[%s3492_s0 + $0x50] ss:$28 sps:$4 sm:$0xff]   ;;  %v1549_v13 = vld [vmem:[%s3493_s3 + $0x20] sm:$0xff] }
  0x53   :  { %2272 = vmatpush3.bf16.msra.mxu1 %v2562_v14  ;;  %1177 = vmatprep.mubr.bf16.mxu1 %v2565_v15  ;;  %v1550_v14 = vld [vmem:[%s3493_s3 + $0x28] sm:$0xff] }
  0x54   :  { %1305 = vmatprep.mubr.bf16.mxu0 %v2569_v16  ;;  %v2439_v15 = vpack.c.bf16 %v1550_v14, %v1549_v13  ;;  %v2640_v16 = vld [vmem:[%s3492_s0 + $0x88] ss:$28 sps:$4 sm:$0xff]  }
  0x5a   :  { %1178 = vmatmul.mubr.bf16.gmra.mrb[28].mxu1 %v2570_v18  ;;  %1306 = vmatmul.mubr.bf16.vlgmr.msra.gmra.mrb[28].mxu0 %v2567_v17  ;;  %v2641_v17 = vld [vmem:[%s3492_s0 + $0xc0] ss:$28 sps:$4 sm:$0xff]   ;;  %v1551_v18 = vld [vmem:[%s3493_s3 + $0x30] sm:$0xff] }
  0x5b   :  { %1185 = vmatprep.mubr.bf16.mxu1 %v2571_v19  ;;  %1313 = vmatprep.mubr.bf16.mxu0 %v2573_v20  ;;  %v1552_v19 = vld [vmem:[%s3493_s3 + $0x38] sm:$0xff] }
  0x5c   :  { %2434 = vmatpush3.bf16.msra.mxu0 %v2433_v2  ;;  %v2442_v20 = vpack.c.bf16 %v1552_v19, %v1551_v18 }
  0x5d   :  { %2435 = vmatprep.subr.bf16.mxu0 %v2652_v63 }
  0x60   :  { %2437 = vmatpush3.bf16.msra.mxu0 %v2436_v11 }
  0x61   :  { %2438 = vmatprep.subr.bf16.mxu0 %v2652_v63 }
  0x62   :  { %1186 = vmatmul.mubr.bf16.gmra.mrb[32].mxu1 %v2575_v21  ;;  %1314 = vmatmul.mubr.bf16.gmra.mrb[32].mxu0 %v2576_v22  ;;  %v2642_v21 = vld [vmem:[%s3492_s0 + $0xf8] ss:$28 sps:$4 sm:$0xff]   ;;  %v1553_v22 = vld [vmem:[%s3493_s3 + $0x40] sm:$0xff] }
  0x63   :  { %1193 = vmatprep.mubr.bf16.mxu1 %v2577_v23  ;;  %1321 = vmatprep.mubr.bf16.mxu0 %v2579_v24  ;;  %v1554_v23 = vld [vmem:[%s3493_s3 + $0x48] sm:$0xff] }
  0x64   :  { %2440 = vmatpush3.bf16.msra.mxu0 %v2439_v15  ;;  %v2643_v24 = vld [vmem:[%s3492_s0 + $0x130] ss:$28 sps:$4 sm:$0xff]  }
  0x65   :  { %2441 = vmatprep.subr.bf16.mxu0 %v2652_v63 }
  0x68   :  { %2443 = vmatpush3.bf16.msra.mxu0 %v2442_v20 }
  0x69   :  { %2444 = vmatprep.subr.bf16.mxu0 %v2652_v63 }
  0x6a   :  { %1194 = vmatmul.mubr.bf16.gmra.mrb[36].mxu1 %v2581_v25  ;;  %1322 = vmatmul.mubr.bf16.gmra.mrb[36].mxu0 %v2582_v26  ;;  %v2445_v25 = vpack.c.bf16 %v1554_v23, %v1553_v22  ;;  %v2644_v26 = vld [vmem:[%s3492_s0 + $0x168] ss:$28 sps:$4 sm:$0xff]  }
  0x6b   :  { %1201 = vmatprep.mubr.bf16.mxu1 %v2583_v27  ;;  %1329 = vmatprep.mubr.bf16.mxu0 %v2585_v28  ;;  %v1555_v27 = vld [vmem:[%s3493_s3 + $0x50] sm:$0xff]  ;;  %v1556_v28 = vld [vmem:[%s3493_s3 + $0x58] sm:$0xff] }
  0x6c   :  { %2446 = vmatpush3.bf16.msra.mxu0 %v2445_v25 }
  0x6d   :  { %2447 = vmatprep.subr.bf16.mxu0 %v2652_v63 }
  0x72   :  { %1202 = vmatmul.mubr.bf16.gmra.mrb[40].mxu1 %v2587_v29  ;;  %1330 = vmatmul.mubr.bf16.gmra.mrb[40].mxu0 %v2588_v30  ;;  %v2448_v29 = vpack.c.bf16 %v1556_v28, %v1555_v27  ;;  %v2645_v30 = vld [vmem:[%s3492_s0 + $0x1a0] ss:$28 sps:$4 sm:$0xff]  }
  0x73   :  { %1209 = vmatprep.mubr.bf16.mxu1 %v2589_v31  ;;  %1337 = vmatprep.mubr.bf16.mxu0 %v2591_v32 }
  0x74   :  { %2449 = vmatpush3.bf16.msra.mxu0 %v2448_v29 }
  0x75   :  { %2450 = vmatprep.subr.bf16.mxu0 %v2652_v63 }
  0x7a   :  { %1210 = vmatmul.mubr.bf16.gmra.mrb[44].mxu1 %v2593_v33  ;;  %1338 = vmatmul.mubr.bf16.gmra.mrb[44].mxu0 %v2594_v34  ;;  %v2646_v34 = vld [vmem:[%s3492_s0 + $0x1d8] ss:$28 sps:$4 sm:$0xff]  }
  0x7b   :  { %1217 = vmatprep.mubr.bf16.mxu1 %v2595_v35  ;;  %1345 = vmatprep.mubr.bf16.mxu0 %v2597_v36 }
  0x82   :  { %1218 = vmatmul.mubr.bf16.gmra.mrb[48].mxu1 %v2599_v37  ;;  %1346 = vmatmul.mubr.bf16.gmra.mrb[48].mxu0 %v2600_v38 }
  0x83   :  { %1225 = vmatprep.mubr.bf16.mxu1 %v2601_v39  ;;  %1353 = vmatprep.mubr.bf16.mxu0 %v2603_v40 }
  0x8a   :  { %1226 = vmatmul.mubr.bf16.gmra.mrb[52].mxu1 %v2605_v41  ;;  %1354 = vmatmul.mubr.bf16.gmra.mrb[52].mxu0 %v2606_v42 }
  0x8b   :  { %1233 = vmatprep.mubr.bf16.mxu1 %v2607_v43  ;;  %1361 = vmatprep.mubr.bf16.mxu0 %v2609_v44  ;;  %v1557_v44 = vld [vmem:[%s3493_s3 + $0x60] sm:$0xff] }
  0x92   :  { %1234 = vmatmul.mubr.bf16.gmra.mrb[56].mxu1 %v2611_v45  ;;  %1362 = vmatmul.mubr.bf16.gmra.mrb[56].mxu0 %v2612_v46  ;;  %v1558_v45 = vld [vmem:[%s3493_s3 + $0x68] sm:$0xff] }
  0x93   :  { %1241 = vmatprep.mubr.bf16.mxu1 %v2613_v47  ;;  %1369 = vmatprep.mubr.bf16.mxu0 %v2615_v48  ;;  %v2451_v46 = vpack.c.bf16 %v1558_v45, %v1557_v44 }
  0x95   :  { %2452 = vmatpush3.bf16.msra.mxu0 %v2451_v46 }
  0x96   :  { %2453 = vmatprep.subr.bf16.mxu0 %v2652_v63  ;;  %v1559_v63 = vld [vmem:[%s3493_s3 + $0x70] sm:$0xff] }
  0x97   :  { %v2454_v1 = vpack.c.bf16 %v1560_v0, %v1559_v63 }
  0x99   :  { %2455 = vmatpush3.bf16.msra.mxu0 %v2454_v1 }
  0x9a   :  { %1242 = vmatmul.mubr.bf16.gmra.mrb[60].mxu1 %v2617_v49  ;;  %1370 = vmatmul.mubr.bf16.gmra.mrb[60].mxu0 %v2618_v50  ;;  %v2647_v50 = vld [vmem:[%s3492_s0 + $0x210] ss:$28 sps:$4 sm:$0xff]  }
  0x9b   :  { %1249 = vmatprep.mubr.bf16.mxu1 %v2619_v51  ;;  %1377 = vmatprep.mubr.bf16.mxu0 %v2621_v52 }
  0xa2   :  { %1250 = vmatmul.mubr.bf16.gmra.mrb[64].mxu1 %v2623_v53  ;;  %1378 = vmatmul.mubr.bf16.gmra.mrb[64].mxu0 %v2624_v54 }
  0xa3   :  { %1257 = vmatprep.mubr.bf16.mxu1 %v2625_v55  ;;  %1385 = vmatprep.mubr.bf16.mxu0 %v2627_v56  ;;  %v3176_v56 = vld [vmem:[%s3494_s2] ss:$0 sm:$0xff] }
  0xaa   :  { %1258 = vmatmul.mubr.bf16.gmra.mrb[68].mxu1 %v2629_v58  ;;  %1386 = vmatmul.mubr.bf16.gmra.mrb[68].mxu0 %v2630_v59 }
  0xab   :  { %1265 = vmatprep.mubr.bf16.mxu1 %v1868_v60  ;;  %1393 = vmatprep.mubr.bf16.mxu0 %v2632_v61 }
  0xb2   :  { %1266 = vmatmul.mubr.bf16.gmra.mrb[72].mxu1 %v1867_v3  ;;  %1394 = vmatmul.mubr.bf16.gmra.mrb[72].mxu0 %v2635_v4 }
  0xb3   :  { %1401 = vmatprep.mubr.bf16.mxu0 %v1870_v6  ;;  %2273 = vmatprep.mubr.msk.bf16.mxu1 %vm2653_vm0, %v2651_v5  ;;  %v2648_v6 = vld [vmem:[%s3492_s0 + $0x248] ss:$28 sps:$4 sm:$0xff]  }
  0xba   :  { %1402 = vmatmul.mubr.bf16.gmra.mrb[76].mxu0 %v1869_v7  ;;  %2274 = vmatmul.mubr.msk.bf16.vlgmr.msra.gmra.mrb[76].mxu1 %vm961_vm1, %v2638_v8 }
  0xbb   :  { %2277 = vmatprep.mubr.msk.bf16.mxu1 %vm2653_vm0, %v2651_v5  ;;  %2357 = vmatprep.mubr.msk.f32.mxu0 %vm2653_vm0, %v2651_v5 }
  0xc2   :  { %2278 = vmatmul.mubr.msk.bf16.gmra.mrb[80].mxu1 %vm961_vm1, %v2639_v12 }
  0xc3   :  { %2281 = vmatprep.mubr.msk.bf16.mxu1 %vm2653_vm0, %v2651_v5 }
  0xca   :  { %2282 = vmatmul.mubr.msk.bf16.gmra.mrb[84].mxu1 %vm961_vm1, %v2640_v16 }
  0xcb   :  { %2285 = vmatprep.mubr.msk.bf16.mxu1 %vm2653_vm0, %v2651_v5 }
  0xd2   :  { %2286 = vmatmul.mubr.msk.bf16.gmra.mrb[88].mxu1 %vm961_vm1, %v2641_v17 }
  0xd3   :  { %2289 = vmatprep.mubr.msk.bf16.mxu1 %vm2653_vm0, %v2651_v5 }
  0xda   :  { %2290 = vmatmul.mubr.msk.bf16.gmra.mrb[92].mxu1 %vm961_vm1, %v2642_v21  ;;  %v2649_v21 = vld [vmem:[%s3492_s0 + $0x280] ss:$28 sps:$4 sm:$0xff]  }
  0xdb   :  { %2293 = vmatprep.mubr.msk.bf16.mxu1 %vm2653_vm0, %v2651_v5 }
  0xe2   :  { %2294 = vmatmul.mubr.msk.bf16.gmra.mrb[96].mxu1 %vm961_vm1, %v2643_v24 }
  0xe3   :  { %2297 = vmatprep.mubr.msk.bf16.mxu1 %vm2653_vm0, %v2651_v5 }
  0xea   :  { %2298 = vmatmul.mubr.msk.bf16.gmra.mrb[100].mxu1 %vm961_vm1, %v2644_v26 }
  0xeb   :  { %2301 = vmatprep.mubr.msk.bf16.mxu1 %vm2653_vm0, %v2651_v5 }
  0xf2   :  { %2302 = vmatmul.mubr.msk.bf16.gmra.mrb[104].mxu1 %vm961_vm1, %v2645_v30 }
  0xf3   :  { %2305 = vmatprep.mubr.msk.bf16.mxu1 %vm2653_vm0, %v2651_v5 }
  0xf5   :  { %v1992_v31 = vpop.f32.mrb[0].mxu1  ;;  %v1950_v32 = vpop.f32.mrb[0].mxu0 }
  0xf6   :  { %v1993_v33 = vpop.f32.mrb[1].mxu1  ;;  %v1951_v35 = vpop.f32.mrb[1].mxu0 }
  0xf7   :  { %v3150_v36 = vadd.f32 %v1993_v33, %v1992_v31  ;;  %v1995_v37 = vpop.f32.mrb[2].mxu1  ;;  %v3152_v38 = vadd.f32 %v1951_v35, %v1950_v32  ;;  %v1953_v39 = vpop.f32.mrb[2].mxu0 }
  0xf8   :  { %v1996_v40 = vpop.f32.mrb[3].mxu1  ;;  %v1954_v41 = vpop.f32.mrb[3].mxu0 }
  0xf9   :  { %v3154_v42 = vadd.f32 %v1996_v40, %v1995_v37  ;;  %v3156_v43 = vadd.f32 %v1954_v41, %v1953_v39  ;;  %v2650_v37 = vld [vmem:[%s3492_s0 + $0x2b8] ss:$0 sps:$4 sm:$0xff]  }
  0xfa   :  { %2306 = vmatmul.mubr.msk.bf16.gmra.mrb[108].mxu1 %vm961_vm1, %v2646_v34 }
  0xfb   :  { %2309 = vmatprep.mubr.msk.bf16.mxu1 %vm2653_vm0, %v2651_v5 }
  0xfd   :  { %v1998_v47 = vpop.f32.mrb[4].mxu1  ;;  %v1956_v48 = vpop.f32.mrb[4].mxu0 }
  0xfe   :  { %v1999_v49 = vpop.f32.mrb[5].mxu1  ;;  %v1957_v51 = vpop.f32.mrb[5].mxu0 }
  0xff   :  { %v2000_v52 = vadd.f32 %v1999_v49, %v1998_v47  ;;  %v2001_v53 = vpop.f32.mrb[6].mxu1  ;;  %v3171_v54 = vadd.f32 %v1957_v51, %v1956_v48  ;;  %v1959_v55 = vpop.f32.mrb[6].mxu0 }
 0x100   :  { %v2002_v57 = vpop.f32.mrb[7].mxu1  ;;  %v1960_v58 = vpop.f32.mrb[7].mxu0 }
 0x101   :  { %v3179_v59 = vadd.f32 %v2000_v52, %v3176_v56  ;;  %v2003_v60 = vadd.f32 %v2002_v57, %v2001_v53  ;;  %v3181_v61 = vadd.f32 %v1960_v58, %v1959_v55 }
 0x102   :  { %2310 = vmatmul.mubr.msk.bf16.gmra.mrb[112].mxu1 %vm961_vm1, %v2647_v50 }
 0x103   :  { %v3185_v62 = vadd.f32 %v2003_v60, %v3176_v56  ;;  %2313 = vmatprep.mubr.msk.bf16.mxu1 %vm2653_vm0, %v2651_v5 }
 0x105   :  { %v2004_v2 = vpop.f32.mrb[8].mxu1  ;;  %v1962_v3 = vpop.f32.mrb[8].mxu0 }
 0x106   :  { %v2005_v4 = vpop.f32.mrb[9].mxu1  ;;  %v1963_v7 = vpop.f32.mrb[9].mxu0 }
 0x107   :  { %v2006_v8 = vadd.f32 %v2005_v4, %v2004_v2  ;;  %v2007_v9 = vpop.f32.mrb[10].mxu1  ;;  %v3198_v10 = vadd.f32 %v1963_v7, %v1962_v3  ;;  %v1965_v11 = vpop.f32.mrb[10].mxu0 }
 0x108   :  { %v2008_v12 = vpop.f32.mrb[11].mxu1  ;;  %v1966_v13 = vpop.f32.mrb[11].mxu0 }
 0x109   :  { %v3201_v14 = vadd.f32 %v2006_v8, %v3176_v56  ;;  %v2009_v15 = vadd.f32 %v2008_v12, %v2007_v9  ;;  %v3203_v16 = vadd.f32 %v1966_v13, %v1965_v11  ;;  %v1039_v12 = vadd.f32 %v3156_v43, %v3176_v56 }
 0x10a   :  { %2314 = vmatmul.mubr.msk.bf16.gmra.mrb[116].mxu1 %vm961_vm1, %v2648_v6  ;;  %v1036_v6 = vadd.f32 %v3152_v38, %v3176_v56  ;;  %v1044_v38 = vadd.f32 %v3171_v54, %v3176_v56  ;;  %v1047_v43 = vadd.f32 %v3181_v61, %v3176_v56 }
 0x10b   :  { %v3207_v17 = vadd.f32 %v2009_v15, %v3176_v56  ;;  %2317 = vmatprep.mubr.msk.bf16.mxu1 %vm2653_vm0, %v2651_v5 }
 0x10d   :  { %v2010_v18 = vpop.f32.mrb[12].mxu1  ;;  %v1968_v19 = vpop.f32.mrb[12].mxu0 }
 0x10e   :  { %v2011_v20 = vpop.f32.mrb[13].mxu1  ;;  %v1969_v22 = vpop.f32.mrb[13].mxu0 }
 0x10f   :  { %v2012_v23 = vadd.f32 %v2011_v20, %v2010_v18  ;;  %v2013_v24 = vpop.f32.mrb[14].mxu1  ;;  %v3214_v25 = vadd.f32 %v1969_v22, %v1968_v19  ;;  %v1971_v26 = vpop.f32.mrb[14].mxu0 }
 0x110   :  { %v2014_v27 = vpop.f32.mrb[15].mxu1  ;;  %v1972_v28 = vpop.f32.mrb[15].mxu0 }
 0x111   :  { %v3217_v29 = vadd.f32 %v2012_v23, %v3176_v56  ;;  %v2015_v30 = vadd.f32 %v2014_v27, %v2013_v24  ;;  %v3219_v31 = vadd.f32 %v1972_v28, %v1971_v26 }
 0x112   :  { %2318 = vmatmul.mubr.msk.bf16.gmra.mrb[120].mxu1 %vm961_vm1, %v2649_v21 }
 0x113   :  { %v3223_v32 = vadd.f32 %v2015_v30, %v3176_v56  ;;  %2321 = vmatprep.mubr.msk.bf16.mxu1 %vm2653_vm0, %v2651_v5 }
 0x115   :  { %v2016_v33 = vpop.f32.mrb[16].mxu1  ;;  %v1974_v34 = vpop.f32.mrb[16].mxu0 }
 0x116   :  { %v2017_v35 = vpop.f32.mrb[17].mxu1  ;;  %v1975_v39 = vpop.f32.mrb[17].mxu0 }
 0x117   :  { %v2018_v40 = vadd.f32 %v2017_v35, %v2016_v33  ;;  %v2019_v41 = vpop.f32.mrb[18].mxu1  ;;  %v3230_v44 = vadd.f32 %v1975_v39, %v1974_v34  ;;  %v1977_v45 = vpop.f32.mrb[18].mxu0 }
 0x118   :  { %v2020_v46 = vpop.f32.mrb[19].mxu1  ;;  %v1978_v47 = vpop.f32.mrb[19].mxu0 }
 0x119   :  { %v3233_v48 = vadd.f32 %v2018_v40, %v3176_v56  ;;  %v2021_v49 = vadd.f32 %v2020_v46, %v2019_v41  ;;  %v3235_v50 = vadd.f32 %v1978_v47, %v1977_v45 }
 0x11a   :  { %2322 = vmatmul.mubr.msk.bf16.gmra.mrb[124].mxu1 %vm961_vm1, %v2650_v37 }
 0x11b   :  { %v3239_v51 = vadd.f32 %v2021_v49, %v3176_v56 }
 0x11d   :  { %v2022_v52 = vpop.f32.mrb[20].mxu1  ;;  %v1980_v53 = vpop.f32.mrb[20].mxu0 }
 0x11e   :  { %v2023_v55 = vpop.f32.mrb[21].mxu1  ;;  %v1981_v57 = vpop.f32.mrb[21].mxu0 }
 0x11f   :  { %v2024_v58 = vadd.f32 %v2023_v55, %v2022_v52  ;;  %v2025_v60 = vpop.f32.mrb[22].mxu1  ;;  %v3241_v63 = vadd.f32 %v1981_v57, %v1980_v53  ;;  %v1983_v0 = vpop.f32.mrb[22].mxu0  ;;  %v1052_v53 = vadd.f32 %v3198_v10, %v3176_v56 }
 0x120   :  { %v2026_v1 = vpop.f32.mrb[23].mxu1  ;;  %v1984_v2 = vpop.f32.mrb[23].mxu0  ;;  %v1055_v60 = vadd.f32 %v3203_v16, %v3176_v56 }
 0x121   :  { %v3244_v3 = vadd.f32 %v2024_v58, %v3176_v56  ;;  %v3246_v4 = vadd.f32 %v1984_v2, %v1983_v0 }
 0x125   :  { %v2044_v7 = vpop.f32.mrb[24].mxu1  ;;  %v1986_v8 = vpop.f32.mrb[24].mxu0 }
 0x126   :  { %v2045_v9 = vpop.f32.mrb[25].mxu1  ;;  %v1987_v11 = vpop.f32.mrb[25].mxu0 }
 0x127   :  { %v2046_v13 = vadd.f32 %v2045_v9, %v2044_v7  ;;  %v2047_v15 = vpop.f32.mrb[26].mxu1  ;;  %v3252_v18 = vadd.f32 %v1987_v11, %v1986_v8  ;;  %v1989_v19 = vpop.f32.mrb[26].mxu0 }
 0x128   :  { %v2048_v20 = vpop.f32.mrb[27].mxu1  ;;  %v1990_v21 = vpop.f32.mrb[27].mxu0 }
 0x129   :  { %v1172_v22 = vadd.f32 %v2046_v13, %v1036_v6  ;;  %v2049_v23 = vadd.f32 %v2048_v20, %v2047_v15  ;;  %v3254_v24 = vadd.f32 %v1990_v21, %v1989_v19  ;;  %v1060_v19 = vadd.f32 %v3214_v25, %v3176_v56 }
 0x12b   :  { %v1175_v26 = vadd.f32 %v2049_v23, %v1039_v12  ;;  %v1063_v23 = vadd.f32 %v3219_v31, %v3176_v56 }
 0x12d   :  { %v2050_v27 = vpop.f32.mrb[28].mxu1  ;;  %v2138_v28 = vpop.f32.mrb[28].mxu0 }
 0x12e   :  { %v2051_v30 = vpop.f32.mrb[29].mxu1  ;;  %v2139_v33 = vpop.f32.mrb[29].mxu0 }
 0x12f   :  { %v2052_v34 = vadd.f32 %v2051_v30, %v2050_v27  ;;  %v2140_v35 = vadd.f32 %v2139_v33, %v2138_v28  ;;  %v2053_v37 = vpop.f32.mrb[30].mxu1  ;;  %v2141_v39 = vpop.f32.mrb[30].mxu0 }
 0x130   :  { %v2054_v40 = vpop.f32.mrb[31].mxu1  ;;  %v2142_v41 = vpop.f32.mrb[31].mxu0 }
 0x131   :  { %v1180_v45 = vadd.f32 %v2052_v34, %v1044_v38  ;;  %v2055_v46 = vadd.f32 %v2054_v40, %v2053_v37  ;;  %v2143_v47 = vadd.f32 %v2142_v41, %v2141_v39  ;;  %v3260_v49 = vadd.f32 %v2140_v35, %v1172_v22 }
 0x132   :  { %v1068_v40 = vadd.f32 %v3230_v44, %v3176_v56 }
 0x133   :  { %v1183_v52 = vadd.f32 %v2055_v46, %v1047_v43  ;;  %v3262_v54 = vadd.f32 %v2143_v47, %v1175_v26  ;;  %v1071_v47 = vadd.f32 %v3235_v50, %v3176_v56 }
 0x135   :  { %v2056_v55 = vpop.f32.mrb[32].mxu1  ;;  %v2144_v57 = vpop.f32.mrb[32].mxu0 }
 0x136   :  { %v2057_v61 = vpop.f32.mrb[33].mxu1  ;;  %v2145_v58 = vpop.f32.mrb[33].mxu0 }
 0x137   :  { %v2058_v0 = vadd.f32 %v2057_v61, %v2056_v55  ;;  %v2146_v1 = vadd.f32 %v2145_v58, %v2144_v57  ;;  %v2059_v2 = vpop.f32.mrb[34].mxu1  ;;  %v2147_v6 = vpop.f32.mrb[34].mxu0 }
 0x138   :  { %v2060_v7 = vpop.f32.mrb[35].mxu1  ;;  %v2148_v8 = vpop.f32.mrb[35].mxu0 }
 0x139   :  { %v1188_v9 = vadd.f32 %v2058_v0, %v1052_v53  ;;  %v2061_v11 = vadd.f32 %v2060_v7, %v2059_v2  ;;  %v2149_v12 = vadd.f32 %v2148_v8, %v2147_v6  ;;  %v3268_v13 = vadd.f32 %v2146_v1, %v1180_v45 }
 0x13a   :  { %v1076_v7 = vadd.f32 %v3241_v63, %v3176_v56 }
 0x13b   :  { %v1191_v15 = vadd.f32 %v2061_v11, %v1055_v60  ;;  %v3270_v10 = vadd.f32 %v2149_v12, %v1183_v52  ;;  %v1079_v12 = vadd.f32 %v3246_v4, %v3176_v56 }
 0x13d   :  { %v2062_v20 = vpop.f32.mrb[36].mxu1  ;;  %v2150_v21 = vpop.f32.mrb[36].mxu0 }
 0x13e   :  { %v2063_v16 = vpop.f32.mrb[37].mxu1  ;;  %v2151_v22 = vpop.f32.mrb[37].mxu0 }
 0x13f   :  { %v2064_v26 = vadd.f32 %v2063_v16, %v2062_v20  ;;  %v2152_v38 = vadd.f32 %v2151_v22, %v2150_v21  ;;  %v2065_v27 = vpop.f32.mrb[38].mxu1  ;;  %v2153_v28 = vpop.f32.mrb[38].mxu0 }
 0x140   :  { %v2066_v30 = vpop.f32.mrb[39].mxu1  ;;  %v2154_v33 = vpop.f32.mrb[39].mxu0 }
 0x141   :  { %v1196_v43 = vadd.f32 %v2064_v26, %v1060_v19  ;;  %v2067_v34 = vadd.f32 %v2066_v30, %v2065_v27  ;;  %v2155_v35 = vadd.f32 %v2154_v33, %v2153_v28  ;;  %v3276_v37 = vadd.f32 %v2152_v38, %v1188_v9 }
 0x142   :  { %v1084_v30 = vadd.f32 %v3252_v18, %v3176_v56 }
 0x143   :  { %v1199_v39 = vadd.f32 %v2067_v34, %v1063_v23  ;;  %v3278_v25 = vadd.f32 %v2155_v35, %v1191_v15  ;;  %v1087_v35 = vadd.f32 %v3254_v24, %v3176_v56  ;;  %v1092_v24 = vadd.f32 %v3150_v36, %v3176_v56 }
 0x145   :  { %v2068_v41 = vpop.f32.mrb[40].mxu1  ;;  %v2156_v45 = vpop.f32.mrb[40].mxu0 }
 0x146   :  { %v2069_v31 = vpop.f32.mrb[41].mxu1  ;;  %v2157_v46 = vpop.f32.mrb[41].mxu0 }
 0x147   :  { %v2070_v52 = vadd.f32 %v2069_v31, %v2068_v41  ;;  %v2158_v53 = vadd.f32 %v2157_v46, %v2156_v45  ;;  %v2071_v55 = vpop.f32.mrb[42].mxu1  ;;  %v2159_v57 = vpop.f32.mrb[42].mxu0 }
 0x148   :  { %v2072_v61 = vpop.f32.mrb[43].mxu1  ;;  %v2160_v58 = vpop.f32.mrb[43].mxu0 }
 0x149   :  { %v1204_v60 = vadd.f32 %v2070_v52, %v1068_v40  ;;  %v2073_v0 = vadd.f32 %v2072_v61, %v2071_v55  ;;  %v2161_v1 = vadd.f32 %v2160_v58, %v2159_v57  ;;  %v3284_v2 = vadd.f32 %v2158_v53, %v1196_v43 }
 0x14b   :  { %v1207_v6 = vadd.f32 %v2073_v0, %v1071_v47  ;;  %v3286_v44 = vadd.f32 %v2161_v1, %v1199_v39 }
 0x14d   :  { %v2074_v8 = vpop.f32.mrb[44].mxu1  ;;  %v2162_v9 = vpop.f32.mrb[44].mxu0 }
 0x14e   :  { %v2075_v50 = vpop.f32.mrb[45].mxu1  ;;  %v2163_v11 = vpop.f32.mrb[45].mxu0 }
 0x14f   :  { %v2076_v15 = vadd.f32 %v2075_v50, %v2074_v8  ;;  %v2164_v19 = vadd.f32 %v2163_v11, %v2162_v9  ;;  %v2077_v20 = vpop.f32.mrb[46].mxu1  ;;  %v2165_v21 = vpop.f32.mrb[46].mxu0  ;;  %v1095_v9 = vadd.f32 %v3154_v42, %v3176_v56 }
 0x150   :  { %v2078_v16 = vpop.f32.mrb[47].mxu1  ;;  %v2166_v22 = vpop.f32.mrb[47].mxu0 }
 0x151   :  { %v1212_v23 = vadd.f32 %v2076_v15, %v1076_v7  ;;  %v2079_v26 = vadd.f32 %v2078_v16, %v2077_v20  ;;  %v2167_v38 = vadd.f32 %v2166_v22, %v2165_v21  ;;  %v3292_v27 = vadd.f32 %v2164_v19, %v1204_v60 }
 0x153   :  { %v1215_v28 = vadd.f32 %v2079_v26, %v1079_v12  ;;  %v3294_v63 = vadd.f32 %v2167_v38, %v1207_v6 }
 0x155   :  { %v2080_v33 = vpop.f32.mrb[48].mxu1  ;;  %v2168_v43 = vpop.f32.mrb[48].mxu0 }
 0x156   :  { %v2081_v4 = vpop.f32.mrb[49].mxu1  ;;  %v2169_v34 = vpop.f32.mrb[49].mxu0 }
 0x157   :  { %v2082_v39 = vadd.f32 %v2081_v4, %v2080_v33  ;;  %v2170_v40 = vadd.f32 %v2169_v34, %v2168_v43  ;;  %v2083_v41 = vpop.f32.mrb[50].mxu1  ;;  %v2171_v45 = vpop.f32.mrb[50].mxu0 }
 0x158   :  { %v2084_v31 = vpop.f32.mrb[51].mxu1  ;;  %v2172_v46 = vpop.f32.mrb[51].mxu0 }
 0x159   :  { %v1220_v47 = vadd.f32 %v2082_v39, %v1084_v30  ;;  %v2085_v52 = vadd.f32 %v2084_v31, %v2083_v41  ;;  %v2173_v53 = vadd.f32 %v2172_v46, %v2171_v45  ;;  %v3300_v55 = vadd.f32 %v2170_v40, %v1212_v23 }
 0x15b   :  { %v1223_v57 = vadd.f32 %v2085_v52, %v1087_v35  ;;  %v3302_v18 = vadd.f32 %v2173_v53, %v1215_v28 }
 0x15d   :  { %v2086_v61 = vpop.f32.mrb[52].mxu1  ;;  %v2174_v58 = vpop.f32.mrb[52].mxu0 }
 0x15e   :  { %v2087_v60 = vpop.f32.mrb[53].mxu1  ;;  %v2175_v0 = vpop.f32.mrb[53].mxu0 }
 0x15f   :  { %v2088_v1 = vadd.f32 %v2087_v60, %v2086_v61  ;;  %v2176_v6 = vadd.f32 %v2175_v0, %v2174_v58  ;;  %v2089_v7 = vpop.f32.mrb[54].mxu1  ;;  %v2177_v8 = vpop.f32.mrb[54].mxu0 }
 0x160   :  { %v2090_v50 = vpop.f32.mrb[55].mxu1  ;;  %v2178_v11 = vpop.f32.mrb[55].mxu0 }
 0x161   :  { %v1228_v12 = vadd.f32 %v2088_v1, %v1092_v24  ;;  %v2091_v15 = vadd.f32 %v2090_v50, %v2089_v7  ;;  %v2179_v19 = vadd.f32 %v2178_v11, %v2177_v8  ;;  %v3308_v20 = vadd.f32 %v2176_v6, %v1220_v47 }
 0x163   :  { %v1231_v21 = vadd.f32 %v2091_v15, %v1095_v9  ;;  %v3310_v16 = vadd.f32 %v2179_v19, %v1223_v57 }
 0x165   :  { %v2092_v22 = vpop.f32.mrb[56].mxu1  ;;  %v2180_v23 = vpop.f32.mrb[56].mxu0 }
 0x166   :  { %v2093_v36 = vpop.f32.mrb[57].mxu1  ;;  %v2181_v26 = vpop.f32.mrb[57].mxu0 }
 0x167   :  { %v2094_v38 = vadd.f32 %v2093_v36, %v2092_v22  ;;  %v2182_v28 = vadd.f32 %v2181_v26, %v2180_v23  ;;  %v2095_v30 = vpop.f32.mrb[58].mxu1  ;;  %v2183_v33 = vpop.f32.mrb[58].mxu0 }
 0x168   :  { %v2096_v43 = vpop.f32.mrb[59].mxu1  ;;  %v2184_v42 = vpop.f32.mrb[59].mxu0 }
 0x169   :  { %v1236_v56 = vadd.f32 %v2094_v38, %v3179_v59  ;;  %v2097_v4 = vadd.f32 %v2096_v43, %v2095_v30  ;;  %v2185_v34 = vadd.f32 %v2184_v42, %v2183_v33  ;;  %v3313_v35 = vadd.f32 %v2182_v28, %v1228_v12 }
 0x16b   :  { %v1239_v39 = vadd.f32 %v2097_v4, %v3185_v62  ;;  %v3316_v40 = vadd.f32 %v2185_v34, %v1231_v21 }
 0x16d   :  { %v2098_v41 = vpop.f32.mrb[60].mxu1  ;;  %v2186_v45 = vpop.f32.mrb[60].mxu0 }
 0x16e   :  { %v2099_v31 = vpop.f32.mrb[61].mxu1  ;;  %v2187_v46 = vpop.f32.mrb[61].mxu0 }
 0x16f   :  { %v2100_v47 = vadd.f32 %v2099_v31, %v2098_v41  ;;  %v2188_v52 = vadd.f32 %v2187_v46, %v2186_v45  ;;  %v2101_v53 = vpop.f32.mrb[62].mxu1  ;;  %v2189_v57 = vpop.f32.mrb[62].mxu0 }
 0x170   :  { %v2102_v61 = vpop.f32.mrb[63].mxu1  ;;  %v2190_v58 = vpop.f32.mrb[63].mxu0 }
 0x171   :  { %v1244_v59 = vadd.f32 %v2100_v47, %v3201_v14  ;;  %v2103_v60 = vadd.f32 %v2102_v61, %v2101_v53  ;;  %v2191_v0 = vadd.f32 %v2190_v58, %v2189_v57  ;;  %v3319_v24 = vadd.f32 %v2188_v52, %v1236_v56 }
 0x173   :  { %v1247_v62 = vadd.f32 %v2103_v60, %v3207_v17  ;;  %v3322_v1 = vadd.f32 %v2191_v0, %v1239_v39 }
 0x175   :  { %v2104_v6 = vpop.f32.mrb[64].mxu1  ;;  %v2192_v7 = vpop.f32.mrb[64].mxu0 }
 0x176   :  { %v2105_v8 = vpop.f32.mrb[65].mxu1  ;;  %v2193_v9 = vpop.f32.mrb[65].mxu0 }
 0x177   :  { %v2106_v50 = vadd.f32 %v2105_v8, %v2104_v6  ;;  %v2194_v11 = vadd.f32 %v2193_v9, %v2192_v7  ;;  %v2107_v12 = vpop.f32.mrb[66].mxu1  ;;  %v2195_v15 = vpop.f32.mrb[66].mxu0 }
 0x178   :  { %v2108_v19 = vpop.f32.mrb[67].mxu1  ;;  %v2196_v21 = vpop.f32.mrb[67].mxu0 }
 0x179   :  { %v1252_v14 = vadd.f32 %v2106_v50, %v3217_v29  ;;  %v2109_v22 = vadd.f32 %v2108_v19, %v2107_v12  ;;  %v2197_v23 = vadd.f32 %v2196_v21, %v2195_v15  ;;  %v3325_v36 = vadd.f32 %v2194_v11, %v1244_v59 }
 0x17b   :  { %v1255_v17 = vadd.f32 %v2109_v22, %v3223_v32  ;;  %v3328_v26 = vadd.f32 %v2197_v23, %v1247_v62 }
 0x17d   :  { %v2110_v38 = vpop.f32.mrb[68].mxu1  ;;  %v2198_v28 = vpop.f32.mrb[68].mxu0 }
 0x17e   :  { %v2111_v30 = vpop.f32.mrb[69].mxu1  ;;  %v2199_v33 = vpop.f32.mrb[69].mxu0 }
 0x17f   :  { %v2112_v43 = vadd.f32 %v2111_v30, %v2110_v38  ;;  %v2200_v42 = vadd.f32 %v2199_v33, %v2198_v28  ;;  %v2113_v56 = vpop.f32.mrb[70].mxu1  ;;  %v2201_v4 = vpop.f32.mrb[70].mxu0 }
 0x180   :  { %v2114_v34 = vpop.f32.mrb[71].mxu1  ;;  %v2202_v39 = vpop.f32.mrb[71].mxu0 }
 0x181   :  { %v1260_v29 = vadd.f32 %v2112_v43, %v3233_v48  ;;  %v2115_v41 = vadd.f32 %v2114_v34, %v2113_v56  ;;  %v2203_v45 = vadd.f32 %v2202_v39, %v2201_v4  ;;  %v3331_v31 = vadd.f32 %v2200_v42, %v1252_v14 }
 0x183   :  { %v1263_v32 = vadd.f32 %v2115_v41, %v3239_v51  ;;  %v3334_v46 = vadd.f32 %v2203_v45, %v1255_v17 }
 0x185   :  { %v2116_v47 = vpop.f32.mrb[72].mxu1  ;;  %v2204_v52 = vpop.f32.mrb[72].mxu0 }
 0x186   :  { %v2117_v53 = vpop.f32.mrb[73].mxu1  ;;  %v2205_v57 = vpop.f32.mrb[73].mxu0 }
 0x187   :  { %v2118_v61 = vadd.f32 %v2117_v53, %v2116_v47  ;;  %v2206_v58 = vadd.f32 %v2205_v57, %v2204_v52  ;;  %v2119_v59 = vpop.f32.mrb[74].mxu1  ;;  %v2207_v60 = vpop.f32.mrb[74].mxu0 }
 0x188   :  { %v2120_v0 = vpop.f32.mrb[75].mxu1  ;;  %v2208_v62 = vpop.f32.mrb[75].mxu0 }
 0x189   :  { %v1268_v48 = vadd.f32 %v2118_v61, %v3244_v3  ;;  %v2209_v6 = vadd.f32 %v2208_v62, %v2207_v60  ;;  %v3337_v7 = vadd.f32 %v2206_v58, %v1260_v29 }
 0x18b   :  { %v3339_v8 = vadd.f32 %v2209_v6, %v1263_v32 }
 0x18d   :  { %v2210_v51 = vpop.f32.mrb[76].mxu0  ;;  %v1443_v9 = vpop.f32.mrb[76].mxu1 }
 0x18e   :  { %v1444_v50 = vadd.f32 %v1443_v9, %v3260_v49  ;;  %v2211_v11 = vpop.f32.mrb[77].mxu0  ;;  %v2275_v12 = vpop.f32.mrb[77].mxu1 }
 0x18f   :  { %v2212_v15 = vadd.f32 %v2211_v11, %v2210_v51  ;;  %v1446_v19 = vpop.f32.mrb[78].mxu1  ;;  %v2213_v21 = vpop.f32.mrb[78].mxu0 }
 0x190   :  { %v1447_v14 = vadd.f32 %v1446_v19, %v3262_v54  ;;  %v2276_v22 = vpop.f32.mrb[79].mxu1  ;;  %2358 = vmatmul.mubr.f32.vlgmr.msra.gmra.mrb[80].mxu0 %v1444_v50  ;;  %v2214_v23 = vpop.f32.mrb[79].mxu0 }
 0x191   :  { %2360 = vmatprep.mubr.msk.f32.mxu0 %vm2653_vm0, %v2651_v5  ;;  %v3345_v3 = vadd.f32 %v2212_v15, %v1268_v48 }
 0x194   :  { %2361 = vmatmul.mubr.f32.gmra.mrb[82].mxu0 %v1447_v14 }
 0x195   :  { %v1451_v17 = vpop.f32.mrb[80].mxu1  ;;  %2363 = vmatprep.mubr.msk.f32.mxu0 %vm2653_vm0, %v2651_v5 }
 0x196   :  { %v1452_v49 = vadd.f32 %v1451_v17, %v3268_v13  ;;  %v2279_v38 = vpop.f32.mrb[81].mxu1 }
 0x197   :  { %v1454_v28 = vpop.f32.mrb[82].mxu1 }
 0x198   :  { %v1455_v30 = vadd.f32 %v1454_v28, %v3270_v10  ;;  %v2280_v54 = vpop.f32.mrb[83].mxu1  ;;  %2364 = vmatmul.mubr.f32.gmra.mrb[84].mxu0 %v1452_v49 }
 0x199   :  { %2366 = vmatprep.mubr.msk.f32.mxu0 %vm2653_vm0, %v2651_v5 }
 0x19c   :  { %2367 = vmatmul.mubr.f32.gmra.mrb[86].mxu0 %v1455_v30 }
 0x19d   :  { %v1459_v33 = vpop.f32.mrb[84].mxu1  ;;  %2369 = vmatprep.mubr.msk.f32.mxu0 %vm2653_vm0, %v2651_v5 }
 0x19e   :  { %v1460_v43 = vadd.f32 %v1459_v33, %v3276_v37  ;;  %v2283_v42 = vpop.f32.mrb[85].mxu1 }
 0x19f   :  { %v1462_v56 = vpop.f32.mrb[86].mxu1 }
 0x1a0   :  { %v1463_v13 = vadd.f32 %v1462_v56, %v3278_v25  ;;  %v2284_v4 = vpop.f32.mrb[87].mxu1  ;;  %2370 = vmatmul.mubr.f32.gmra.mrb[88].mxu0 %v1460_v43 }
 0x1a1   :  { %2372 = vmatprep.mubr.msk.f32.mxu0 %vm2653_vm0, %v2651_v5 }
 0x1a4   :  { %2373 = vmatmul.mubr.f32.gmra.mrb[90].mxu0 %v1463_v13 }
 0x1a5   :  { %v1467_v10 = vpop.f32.mrb[88].mxu1  ;;  %2375 = vmatprep.mubr.msk.f32.mxu0 %vm2653_vm0, %v2651_v5 }
 0x1a6   :  { %v1468_v34 = vadd.f32 %v1467_v10, %v3284_v2  ;;  %v2287_v39 = vpop.f32.mrb[89].mxu1 }
 0x1a7   :  { %v1470_v29 = vpop.f32.mrb[90].mxu1 }
 0x1a8   :  { %v1471_v37 = vadd.f32 %v1470_v29, %v3286_v44  ;;  %v2288_v41 = vpop.f32.mrb[91].mxu1  ;;  %2376 = vmatmul.mubr.f32.gmra.mrb[92].mxu0 %v1468_v34 }
 0x1a9   :  { %2378 = vmatprep.mubr.msk.f32.mxu0 %vm2653_vm0, %v2651_v5 }
 0x1ac   :  { %2379 = vmatmul.mubr.f32.gmra.mrb[94].mxu0 %v1471_v37 }
 0x1ad   :  { %v1475_v25 = vpop.f32.mrb[92].mxu1  ;;  %2381 = vmatprep.mubr.msk.f32.mxu0 %vm2653_vm0, %v2651_v5 }
 0x1ae   :  { %v1476_v45 = vadd.f32 %v1475_v25, %v3292_v27  ;;  %v2291_v32 = vpop.f32.mrb[93].mxu1 }
 0x1af   :  { %v1478_v47 = vpop.f32.mrb[94].mxu1 }
 0x1b0   :  { %v1479_v2 = vadd.f32 %v1478_v47, %v3294_v63  ;;  %v2292_v52 = vpop.f32.mrb[95].mxu1  ;;  %2382 = vmatmul.mubr.f32.gmra.mrb[96].mxu0 %v1476_v45 }
 0x1b1   :  { %2384 = vmatprep.mubr.msk.f32.mxu0 %vm2653_vm0, %v2651_v5 }
 0x1b4   :  { %2385 = vmatmul.mubr.f32.gmra.mrb[98].mxu0 %v1479_v2 }
 0x1b5   :  { %v1483_v44 = vpop.f32.mrb[96].mxu1  ;;  %2387 = vmatprep.mubr.msk.f32.mxu0 %vm2653_vm0, %v2651_v5 }
 0x1b6   :  { %v1484_v53 = vadd.f32 %v1483_v44, %v3300_v55  ;;  %v2295_v57 = vpop.f32.mrb[97].mxu1 }
 0x1b7   :  { %v1486_v61 = vpop.f32.mrb[98].mxu1 }
 0x1b8   :  { %v1487_v27 = vadd.f32 %v1486_v61, %v3302_v18  ;;  %v2296_v58 = vpop.f32.mrb[99].mxu1  ;;  %2388 = vmatmul.mubr.f32.gmra.mrb[100].mxu0 %v1484_v53 }
 0x1b9   :  { %2390 = vmatprep.mubr.msk.f32.mxu0 %vm2653_vm0, %v2651_v5 }
 0x1bc   :  { %2391 = vmatmul.mubr.f32.gmra.mrb[102].mxu0 %v1487_v27 }
 0x1bd   :  { %v1491_v63 = vpop.f32.mrb[100].mxu1  ;;  %2393 = vmatprep.mubr.msk.f32.mxu0 %vm2653_vm0, %v2651_v5 }
 0x1be   :  { %v1492_v59 = vadd.f32 %v1491_v63, %v3308_v20  ;;  %v2299_v60 = vpop.f32.mrb[101].mxu1 }
 0x1bf   :  { %v1494_v0 = vpop.f32.mrb[102].mxu1 }
 0x1c0   :  { %v1495_v55 = vadd.f32 %v1494_v0, %v3310_v16  ;;  %v2300_v62 = vpop.f32.mrb[103].mxu1  ;;  %2394 = vmatmul.mubr.f32.gmra.mrb[104].mxu0 %v1492_v59 }
 0x1c1   :  { %2396 = vmatprep.mubr.msk.f32.mxu0 %vm2653_vm0, %v2651_v5 }
 0x1c4   :  { %2397 = vmatmul.mubr.f32.gmra.mrb[106].mxu0 %v1495_v55 }
 0x1c5   :  { %v1499_v18 = vpop.f32.mrb[104].mxu1  ;;  %2399 = vmatprep.mubr.msk.f32.mxu0 %vm2653_vm0, %v2651_v5 }
 0x1c6   :  { %v1500_v48 = vadd.f32 %v1499_v18, %v3313_v35  ;;  %v2303_v6 = vpop.f32.mrb[105].mxu1 }
 0x1c7   :  { %v1502_v51 = vpop.f32.mrb[106].mxu1 }
 0x1c8   :  { %v1503_v20 = vadd.f32 %v1502_v51, %v3316_v40  ;;  %v2304_v9 = vpop.f32.mrb[107].mxu1  ;;  %2400 = vmatmul.mubr.f32.gmra.mrb[108].mxu0 %v1500_v48 }
 0x1c9   :  { %2402 = vmatprep.mubr.msk.f32.mxu0 %vm2653_vm0, %v2651_v5 }
 0x1cc   :  { %2403 = vmatmul.mubr.f32.gmra.mrb[110].mxu0 %v1503_v20 }
 0x1cd   :  { %v1507_v16 = vpop.f32.mrb[108].mxu1  ;;  %2405 = vmatprep.mubr.msk.f32.mxu0 %vm2653_vm0, %v2651_v5 }
 0x1ce   :  { %v1508_v50 = vadd.f32 %v1507_v16, %v3319_v24  ;;  %v2307_v11 = vpop.f32.mrb[109].mxu1 }
 0x1cf   :  { %v1510_v12 = vpop.f32.mrb[110].mxu1 }
 0x1d0   :  { %v1511_v35 = vadd.f32 %v1510_v12, %v3322_v1  ;;  %v2308_v15 = vpop.f32.mrb[111].mxu1  ;;  %2406 = vmatmul.mubr.f32.gmra.mrb[112].mxu0 %v1508_v50 }
 0x1d1   :  { %2408 = vmatprep.mubr.msk.f32.mxu0 %vm2653_vm0, %v2651_v5 }
 0x1d4   :  { %2409 = vmatmul.mubr.f32.gmra.mrb[114].mxu0 %v1511_v35 }
 0x1d5   :  { %v1515_v40 = vpop.f32.mrb[112].mxu1  ;;  %2411 = vmatprep.mubr.msk.f32.mxu0 %vm2653_vm0, %v2651_v5 }
 0x1d6   :  { %v1516_v19 = vadd.f32 %v1515_v40, %v3325_v36  ;;  %v2311_v21 = vpop.f32.mrb[113].mxu1 }
 0x1d7   :  { %v1518_v14 = vpop.f32.mrb[114].mxu1 }
 0x1d8   :  { %v1519_v24 = vadd.f32 %v1518_v14, %v3328_v26  ;;  %v2312_v22 = vpop.f32.mrb[115].mxu1  ;;  %2412 = vmatmul.mubr.f32.gmra.mrb[116].mxu0 %v1516_v19 }
 0x1d9   :  { %2414 = vmatprep.mubr.msk.f32.mxu0 %vm2653_vm0, %v2651_v5 }
 0x1dc   :  { %2415 = vmatmul.mubr.f32.gmra.mrb[118].mxu0 %v1519_v24 }
 0x1dd   :  { %v1523_v1 = vpop.f32.mrb[116].mxu1  ;;  %2417 = vmatprep.mubr.msk.f32.mxu0 %vm2653_vm0, %v2651_v5 }
 0x1de   :  { %v1524_v23 = vadd.f32 %v1523_v1, %v3331_v31  ;;  %v2315_v17 = vpop.f32.mrb[117].mxu1 }
 0x1df   :  { %v1526_v49 = vpop.f32.mrb[118].mxu1 }
 0x1e0   :  { %v1527_v36 = vadd.f32 %v1526_v49, %v3334_v46  ;;  %v2316_v38 = vpop.f32.mrb[119].mxu1  ;;  %2418 = vmatmul.mubr.f32.gmra.mrb[120].mxu0 %v1524_v23 }
 0x1e1   :  { %2420 = vmatprep.mubr.msk.f32.mxu0 %vm2653_vm0, %v2651_v5 }
 0x1e4   :  { %2421 = vmatmul.mubr.f32.gmra.mrb[122].mxu0 %v1527_v36 }
 0x1e5   :  { %v1531_v26 = vpop.f32.mrb[120].mxu1  ;;  %2423 = vmatprep.mubr.msk.f32.mxu0 %vm2653_vm0, %v2651_v5 }
 0x1e6   :  { %v1532_v28 = vadd.f32 %v1531_v26, %v3337_v7  ;;  %v2319_v30 = vpop.f32.mrb[121].mxu1 }
 0x1e7   :  { %v1534_v54 = vpop.f32.mrb[122].mxu1 }
 0x1e8   :  { %v1535_v31 = vadd.f32 %v1534_v54, %v3339_v8  ;;  %v2320_v33 = vpop.f32.mrb[123].mxu1  ;;  %2424 = vmatmul.mubr.f32.gmra.mrb[124].mxu0 %v1532_v28 }
 0x1e9   :  { %2426 = vmatprep.mubr.msk.f32.mxu0 %vm2653_vm0, %v2651_v5 }
 0x1ec   :  { %2427 = vmatmul.mubr.f32.gmra.mrb[126].mxu0 %v1535_v31 }
 0x1ed   :  { %v1539_v46 = vpop.f32.mrb[124].mxu1  ;;  %2429 = vmatprep.mubr.msk.f32.mxu0 %vm2653_vm0, %v2651_v5 }
 0x1ee   :  { %v1540_v43 = vadd.f32 %v1539_v46, %v3345_v3  ;;  %v2323_v42 = vpop.f32.mrb[125].mxu1 }
 0x1ef   :  { %v1542_v56 = vpop.f32.mrb[126].mxu1 }
 0x1f0   :  { %v2324_v13 = vpop.f32.mrb[127].mxu1  ;;  %2430 = vmatmul.mubr.f32.gmra.mrb[128].mxu0 %v1540_v43 }
 0x263   :  { %v1627_v7 = vpop.f32.mrb[80].mxu0 }
 0x264   :  { %1751 = vst [vmem:[%s3495_s4] sm:$0xff] %v1627_v7  ;;  %v2359_v8 = vpop.f32.mrb[81].mxu0 }
 0x267   :  { %v1632_v4 = vpop.f32.mrb[82].mxu0 }
 0x268   :  { %1752 = vst [vmem:[%s3495_s4 + $0x8] sm:$0xff] %v1632_v4  ;;  %v2362_v10 = vpop.f32.mrb[83].mxu0 }
 0x26b   :  { %v1637_v34 = vpop.f32.mrb[84].mxu0 }
 0x26c   :  { %1753 = vst [vmem:[%s3495_s4 + $0x10] sm:$0xff] %v1637_v34  ;;  %v2365_v5 = vpop.f32.mrb[85].mxu0 }
 0x26f   :  { %v1642_v3 = vpop.f32.mrb[86].mxu0 }
 0x270   :  { %1754 = vst [vmem:[%s3495_s4 + $0x18] sm:$0xff] %v1642_v3  ;;  %v2368_v39 = vpop.f32.mrb[87].mxu0 }
 0x273   :  { %v1647_v29 = vpop.f32.mrb[88].mxu0 }
 0x274   :  { %1755 = vst [vmem:[%s3495_s4 + $0x20] sm:$0xff] %v1647_v29  ;;  %v2371_v37 = vpop.f32.mrb[89].mxu0 }
 0x277   :  { %v1652_v41 = vpop.f32.mrb[90].mxu0 }
 0x278   :  { %1756 = vst [vmem:[%s3495_s4 + $0x28] sm:$0xff] %v1652_v41  ;;  %v2374_v25 = vpop.f32.mrb[91].mxu0 }
 0x27b   :  { %v1657_v45 = vpop.f32.mrb[92].mxu0 }
 0x27c   :  { %1757 = vst [vmem:[%s3495_s4 + $0x30] sm:$0xff] %v1657_v45  ;;  %v2377_v32 = vpop.f32.mrb[93].mxu0 }
 0x27f   :  { %v1662_v47 = vpop.f32.mrb[94].mxu0 }
 0x280   :  { %1758 = vst [vmem:[%s3495_s4 + $0x38] sm:$0xff] %v1662_v47  ;;  %v2380_v2 = vpop.f32.mrb[95].mxu0 }
 0x283   :  { %v1667_v52 = vpop.f32.mrb[96].mxu0 }
 0x284   :  { %1759 = vst [vmem:[%s3495_s4 + $0x40] sm:$0xff] %v1667_v52  ;;  %v2383_v44 = vpop.f32.mrb[97].mxu0 }
 0x287   :  { %v1672_v53 = vpop.f32.mrb[98].mxu0 }
 0x288   :  { %1760 = vst [vmem:[%s3495_s4 + $0x48] sm:$0xff] %v1672_v53  ;;  %v2386_v57 = vpop.f32.mrb[99].mxu0 }
 0x28b   :  { %v1677_v61 = vpop.f32.mrb[100].mxu0 }
 0x28c   :  { %1761 = vst [vmem:[%s3495_s4 + $0x50] sm:$0xff] %v1677_v61  ;;  %v2389_v27 = vpop.f32.mrb[101].mxu0 }
 0x28f   :  { %v1682_v58 = vpop.f32.mrb[102].mxu0 }
 0x290   :  { %1762 = vst [vmem:[%s3495_s4 + $0x58] sm:$0xff] %v1682_v58  ;;  %v2392_v63 = vpop.f32.mrb[103].mxu0 }
 0x293   :  { %v1687_v59 = vpop.f32.mrb[104].mxu0 }
 0x294   :  { %1763 = vst [vmem:[%s3495_s4 + $0x60] sm:$0xff] %v1687_v59  ;;  %v2395_v60 = vpop.f32.mrb[105].mxu0 }
 0x297   :  { %v1692_v0 = vpop.f32.mrb[106].mxu0 }
 0x298   :  { %1764 = vst [vmem:[%s3495_s4 + $0x68] sm:$0xff] %v1692_v0  ;;  %v2398_v55 = vpop.f32.mrb[107].mxu0 }
 0x29b   :  { %v1697_v62 = vpop.f32.mrb[108].mxu0 }
 0x29c   :  { %1765 = vst [vmem:[%s3495_s4 + $0x70] sm:$0xff] %v1697_v62  ;;  %v2401_v18 = vpop.f32.mrb[109].mxu0 }
 0x29f   :  { %v1702_v48 = vpop.f32.mrb[110].mxu0 }
 0x2a0   :  { %1766 = vst [vmem:[%s3495_s4 + $0x78] sm:$0xff] %v1702_v48  ;;  %v2404_v6 = vpop.f32.mrb[111].mxu0 }
 0x2a3   :  { %v1707_v51 = vpop.f32.mrb[112].mxu0 }
 0x2a4   :  { %1767 = vst [vmem:[%s3495_s4 + $0x80] sm:$0xff] %v1707_v51  ;;  %v2407_v20 = vpop.f32.mrb[113].mxu0 }
 0x2a7   :  { %v1712_v9 = vpop.f32.mrb[114].mxu0 }
 0x2a8   :  { %1768 = vst [vmem:[%s3495_s4 + $0x88] sm:$0xff] %v1712_v9  ;;  %v2410_v16 = vpop.f32.mrb[115].mxu0 }
 0x2ab   :  { %v1717_v50 = vpop.f32.mrb[116].mxu0 }
 0x2ac   :  { %1769 = vst [vmem:[%s3495_s4 + $0x90] sm:$0xff] %v1717_v50  ;;  %v2413_v11 = vpop.f32.mrb[117].mxu0 }
 0x2af   :  { %v1722_v12 = vpop.f32.mrb[118].mxu0 }
 0x2b0   :  { %1770 = vst [vmem:[%s3495_s4 + $0x98] sm:$0xff] %v1722_v12  ;;  %v2416_v35 = vpop.f32.mrb[119].mxu0 }
 0x2b3   :  { %v1727_v15 = vpop.f32.mrb[120].mxu0 }
 0x2b4   :  { %1771 = vst [vmem:[%s3495_s4 + $0xa0] sm:$0xff] %v1727_v15  ;;  %v2419_v40 = vpop.f32.mrb[121].mxu0 }
 0x2b7   :  { %v1732_v19 = vpop.f32.mrb[122].mxu0 }
 0x2b8   :  { %1772 = vst [vmem:[%s3495_s4 + $0xa8] sm:$0xff] %v1732_v19  ;;  %v2422_v21 = vpop.f32.mrb[123].mxu0 }
 0x2bb   :  { %v1737_v14 = vpop.f32.mrb[124].mxu0 }
 0x2bc   :  { %1773 = vst [vmem:[%s3495_s4 + $0xb0] sm:$0xff] %v1737_v14  ;;  %v2425_v24 = vpop.f32.mrb[125].mxu0 }
 0x2bf   :  { %v1742_v22 = vpop.f32.mrb[126].mxu0 }
 0x2c0   :  { %1774 = vst [vmem:[%s3495_s4 + $0xb8] sm:$0xff] %v1742_v22  ;;  %v2428_v1 = vpop.f32.mrb[127].mxu0 }
 0x2c3   :  { %v1747_v23 = vpop.f32.mrb[128].mxu0 }
 0x2c4   :  { %1775 = vst [vmem:[%s3495_s4 + $0xc0] sm:$0xff] %v1747_v23  ;;  %v2431_v17 = vpop.f32.mrb[129].mxu0 }

</bundles_post_ra>
